<compile_context>
chip_gen: v6e
topology: v6e:2x2x1
jax: 0.10.0
libtpu: 0.0.40
codegen_flags: <defaults>
</compile_context>

<pallas_src>
import functools

import jax
import jax.numpy as jnp
from jax import lax
from jax.experimental import pallas as pl
from jax.experimental.pallas import tpu as pltpu


def _round_up(x, m):
    return ((x + m - 1) // m) * m


# ---------------------------------------------------------------------------
# Pallas kernel: per-tap matmul accumulation + folded-BN affine + SiLU epilogue
# ---------------------------------------------------------------------------
def _make_conv_bn_silu_kernel(kw_in, wo_pad):
    def kernel(x_ref, w_ref, scale_ref, bias_ref, o_ref, acc_ref):
        # x_ref:     (1, tmr, wslab, C1)  bf16  input rows for the current height tap
        # w_ref:     (1, kw_in, C1, tn)   bf16  weight slices for the current tap
        # scale/bias:(1, tn)              f32   folded BatchNorm affine
        # o_ref:     (tmr*wo_pad, tn)           lane-dense output tile
        # acc_ref:   (tmr*wo_pad, tn)     f32   accumulator (lives across tap axis)
        t = pl.program_id(2)

        @pl.when(t == 0)
        def _init():
            acc_ref[...] = jnp.zeros_like(acc_ref)

        tmr = x_ref.shape[1]
        c1 = x_ref.shape[3]
        for kw in range(kw_in):                              # static unroll over width taps
            lhs = x_ref[0, :, kw:kw + wo_pad, :]             # (tmr, wo_pad, C1)
            lhs = lhs.reshape(tmr * wo_pad, c1)              # sublane-aligned collapse
            acc_ref[...] += jnp.dot(lhs, w_ref[0, kw],
                                    preferred_element_type=jnp.float32)

        @pl.when(t == pl.num_programs(2) - 1)
        def _finalize():
            y = acc_ref[...] * scale_ref[...] + bias_ref[...]   # folded BN (f32)
            y = y * jax.nn.sigmoid(y)                           # SiLU (f32, EUP)
            o_ref[...] = y.astype(o_ref.dtype)

    return kernel


# ---------------------------------------------------------------------------
# Wrapper: layout plumbing in plain JAX, all compute in the Pallas kernel
# ---------------------------------------------------------------------------
def conv_bn_silu(x_nchw, w_oihw, gamma, beta, run_mean, run_var,
                 *, stride=1, pad=None, eps=1e-5):
    """Conv2d(bias=False, groups=1, dilation=1) -> BatchNorm2d(eval) -> SiLU, NCHW API."""
    N, C1, H, W = x_nchw.shape
    C2, C1w, KH, KW = w_oihw.shape
    assert C1w == C1, "groups != 1 not supported"
    s = int(stride)
    if pad is None:
        pad = KH // 2                      # autopad ('same' for odd k, d=1)

    Ho = (H + 2 * pad - KH) // s + 1
    Wo = (W + 2 * pad - KW) // s + 1

    # ---- tiling choices (lane / sublane friendly) ----
    wo_pad = _round_up(Wo, 16)             # sublane-aligned width (bf16 packs 16 rows/vreg)
    c2p = _round_up(C2, 128)               # lane-dense output channels (>=128, mult of 128)
    tn = 256 if c2p % 256 == 0 else 128    # output-channel tile
    kw_in = KW if s == 1 else 1            # width taps handled inside the kernel
    n_taps = KH if s == 1 else KH * KW     # reduction grid axis length
    wslab = wo_pad + kw_in - 1             # width of the row slab the kernel sees

    m_rows = N * Ho                                       # output image rows
    tmr = max(1, min(m_rows, max(1, 256 // wo_pad)))      # image rows / tile (~256 matmul rows)
    m_rows_pad = _round_up(m_rows, tmr)                   # cdiv-style padding, no tm=M fallback

    # ---- layout plumbing (glue) ----
    # NCHW -> NHWC, bf16 for the MXU.  Zero-pad spatially (+ a little extra so every
    # tap/tile gather stays in-bounds; the extra only feeds rows/cols sliced off later).
    x = jnp.transpose(x_nchw, (0, 2, 3, 1)).astype(jnp.bfloat16)
    h_req = (Ho - 1) * s + KH
    w_req = wslab if s == 1 else (KW - 1) + s * (wo_pad - 1) + 1
    pad_bot = max(pad, h_req - H - pad)
    pad_rgt = max(pad, w_req - W - pad)
    xp = jnp.pad(x, ((0, 0), (pad, pad_bot), (pad, pad_rgt), (0, 0)))

    # Per-tap row gather.  HBM duplication is only KH-fold for stride 1 (1x for 1x1
    # convs); for stride > 1 the width is pre-decimated per tap as well.
    taps = []
    if s == 1:
        for kh in range(KH):
            rows = xp[:, kh:kh + Ho, :wslab, :]                       # (N, Ho, wslab, C1)
            taps.append(rows.reshape(N * Ho, wslab, C1))
    else:
        for kh in range(KH):
            for kw in range(KW):
                rows = xp[:, kh:kh + s * (Ho - 1) + 1:s,
                          kw:kw + s * (wo_pad - 1) + 1:s, :]          # (N, Ho, wo_pad, C1)
                taps.append(rows.reshape(N * Ho, wo_pad, C1))
    x_taps = jnp.stack(taps, axis=0)                                  # (n_taps, m_rows, wslab, C1)
    x_taps = jnp.pad(x_taps, ((0, 0), (0, m_rows_pad - m_rows), (0, 0), (0, 0)))

    # Weights: (C2, C1, KH, KW) -> (n_taps, kw_in, C1, c2p), bf16.
    w = jnp.transpose(w_oihw, (2, 3, 1, 0))                           # (KH, KW, C1, C2)
    w = jnp.pad(w, ((0, 0), (0, 0), (0, 0), (0, c2p - C2)))
    w_taps = w.reshape(n_taps, kw_in, C1, c2p).astype(jnp.bfloat16)

    # Fold BatchNorm (eval) into per-channel scale / bias (f32).
    inv_std = lax.rsqrt(run_var.astype(jnp.float32) + eps)
    scale = gamma.astype(jnp.float32) * inv_std
    bias = beta.astype(jnp.float32) - run_mean.astype(jnp.float32) * scale
    scale = jnp.pad(scale, (0, c2p - C2)).reshape(1, c2p)
    bias = jnp.pad(bias, (0, c2p - C2)).reshape(1, c2p)

    kernel = _make_conv_bn_silu_kernel(kw_in, wo_pad)
    grid = (m_rows_pad // tmr, c2p // tn, n_taps)

    out = pl.pallas_call(
        kernel,
        out_shape=jax.ShapeDtypeStruct((m_rows_pad * wo_pad, c2p), x_nchw.dtype),
        grid=grid,
        in_specs=[
            pl.BlockSpec((1, tmr, wslab, C1), lambda m, c, t: (t, m, 0, 0)),
            pl.BlockSpec((1, kw_in, C1, tn), lambda m, c, t: (t, 0, 0, c)),
            pl.BlockSpec((1, tn), lambda m, c, t: (0, c)),
            pl.BlockSpec((1, tn), lambda m, c, t: (0, c)),
        ],
        out_specs=pl.BlockSpec((tmr * wo_pad, tn), lambda m, c, t: (m, c)),
        scratch_shapes=[pltpu.VMEM((tmr * wo_pad, tn), jnp.float32)],
        compiler_params=pltpu.CompilerParams(
            dimension_semantics=("parallel", "parallel", "arbitrary"),
            vmem_limit_bytes=48 * 1024 * 1024,
        ),
    )(x_taps, w_taps, scale, bias)

    # (m_rows_pad*wo_pad, c2p) -> drop padding -> (N, Ho, Wo, C2) -> NCHW.
    y = out.reshape(m_rows_pad, wo_pad, c2p)[:m_rows, :Wo, :C2]
    y = y.reshape(N, Ho, Wo, C2)
    # NOTE: keeping an NHWC-native pipeline would avoid this transpose entirely.
    return jnp.transpose(y, (0, 3, 1, 2))


# ---------------------------------------------------------------------------
# Pure-JAX reference (for correctness check)
# ---------------------------------------------------------------------------
def conv_bn_silu_ref(x_nchw, w_oihw, gamma, beta, run_mean, run_var,
                     *, stride=1, pad=None, eps=1e-5):
    KH = w_oihw.shape[2]
    if pad is None:
        pad = KH // 2
    y = lax.conv_general_dilated(
        x_nchw, w_oihw,
        window_strides=(stride, stride),
        padding=((pad, pad), (pad, pad)),
        dimension_numbers=("NCHW", "OIHW", "NCHW"),
    )
    inv_std = 1.0 / jnp.sqrt(run_var + eps)
    scale = (gamma * inv_std).reshape(1, -1, 1, 1)
    bias = (beta - run_mean * gamma * inv_std).reshape(1, -1, 1, 1)
    y = y * scale + bias
    return y * jax.nn.sigmoid(y)


if __name__ == "__main__":
    key = jax.random.PRNGKey(0)

    # (N, C1, H, W, C2, k, stride) — Conv(c1, c2, k, s) with autopad, like hgnetv2.
    configs = [
        (2, 4, 16, 16, 8, 3, 1),    # 3x3, stride 1
        (2, 8, 16, 16, 16, 1, 1),   # 1x1 pointwise
        (2, 4, 16, 16, 8, 3, 2),    # 3x3, stride 2
    ]

    for idx, (N, C1, H, W, C2, K, s) in enumerate(configs):
        kk = jax.random.fold_in(key, idx)
        kx, kw, kg, kb, km, kv = jax.random.split(kk, 6)
        x = jax.random.normal(kx, (N, C1, H, W), dtype=jnp.float32)
        w = jax.random.normal(kw, (C2, C1, K, K), dtype=jnp.float32) * 0.1
        gamma = 1.0 + 0.1 * jax.random.normal(kg, (C2,), dtype=jnp.float32)
        beta = 0.1 * jax.random.normal(kb, (C2,), dtype=jnp.float32)
        rmean = 0.1 * jax.random.normal(km, (C2,), dtype=jnp.float32)
        rvar = 1.0 + 0.1 * jax.random.uniform(kv, (C2,), dtype=jnp.float32)

        fn = jax.jit(functools.partial(conv_bn_silu, stride=s, pad=None))
        out = jax.block_until_ready(fn(x, w, gamma, beta, rmean, rvar))
        ref = conv_bn_silu_ref(x, w, gamma, beta, rmean, rvar, stride=s, pad=None)

        assert out.shape == ref.shape, (out.shape, ref.shape)
        # bf16 MXU operands vs f32 reference -> loose tolerance.
        assert jnp.allclose(out, ref, atol=8e-2, rtol=8e-2), \
            float(jnp.max(jnp.abs(out - ref)))

    print("KERNEL_OK")
</pallas_src>

<mosaic_0001>
module attributes {stable_mosaic.version = 11 : i64} {
  func.func @kernel(%arg0: i32, %arg1: i32, %arg2: i32, %arg3: memref<1x16x18x4xbf16, #tpu.memory_space<vmem>>, %arg4: memref<1x3x4x128xbf16, #tpu.memory_space<vmem>>, %arg5: memref<1x128xf32, #tpu.memory_space<vmem>>, %arg6: memref<1x128xf32, #tpu.memory_space<vmem>>, %arg7: memref<256x128xf32, #tpu.memory_space<vmem>>, %arg8: memref<256x128xf32, #tpu.memory_space<vmem>>) attributes {dimension_semantics = [#tpu.dimension_semantics<parallel>, #tpu.dimension_semantics<parallel>, #tpu.dimension_semantics<arbitrary>], iteration_bounds = array<i64: 2, 1, 3>, scalar_prefetch = 0 : i64, scratch_operands = 1 : i64, tpu.core_type = #tpu.core_type<tc>, window_params = [{transform_indices = @transform_0, window_bounds = array<i64: 1, 16, 18, 4>}, {transform_indices = @transform_1, window_bounds = array<i64: 1, 3, 4, 128>}, {transform_indices = @transform_2, window_bounds = array<i64: 1, 128>}, {transform_indices = @transform_3, window_bounds = array<i64: 1, 128>}, {transform_indices = @transform_4, window_bounds = array<i64: 256, 128>}]} {
    %c0_i32 = arith.constant 0 : i32
    %0 = arith.cmpi eq, %arg2, %c0_i32 : i32
    %1 = arith.extui %0 : i1 to i32
    %c0_i32_0 = arith.constant 0 : i32
    %2 = arith.cmpi ne, %1, %c0_i32_0 : i32
    scf.if %2 {
      %cst_37 = arith.constant 0.000000e+00 : f32
      %33 = vector.broadcast %cst_37 : f32 to vector<256x128xf32>
      %c0_38 = arith.constant 0 : index
      %c0_39 = arith.constant 0 : index
      %34 = vector.load %arg8[%c0_38, %c0_39] : memref<256x128xf32, #tpu.memory_space<vmem>>, vector<256x128xf32>
      tpu.vector_store %arg8[%c0_38, %c0_39], %33 {strides = array<i32>} : memref<256x128xf32, #tpu.memory_space<vmem>>, vector<256x128xf32>,
    } else {
    }
    %c0 = arith.constant 0 : index
    %c0_1 = arith.constant 0 : index
    %c0_2 = arith.constant 0 : index
    %c0_3 = arith.constant 0 : index
    %3 = vector.load %arg3[%c0, %c0_1, %c0_2, %c0_3] : memref<1x16x18x4xbf16, #tpu.memory_space<vmem>>, vector<1x16x16x4xbf16>
    %4 = vector.shape_cast %3 : vector<1x16x16x4xbf16> to vector<16x16x4xbf16>
    %5 = vector.shape_cast %4 : vector<16x16x4xbf16> to vector<256x4xbf16>
    %c0_4 = arith.constant 0 : index
    %c0_5 = arith.constant 0 : index
    %6 = vector.load %arg8[%c0_4, %c0_5] : memref<256x128xf32, #tpu.memory_space<vmem>>, vector<256x128xf32>
    %c0_6 = arith.constant 0 : index
    %c0_7 = arith.constant 0 : index
    %c0_8 = arith.constant 0 : index
    %c0_9 = arith.constant 0 : index
    %7 = vector.load %arg4[%c0_6, %c0_7, %c0_8, %c0_9] : memref<1x3x4x128xbf16, #tpu.memory_space<vmem>>, vector<1x1x4x128xbf16>
    %8 = vector.shape_cast %7 : vector<1x1x4x128xbf16> to vector<4x128xbf16>
    %cst = arith.constant dense<0.000000e+00> : vector<256x128xf32>
    %9 = tpu.matmul %5, %8, %cst {dimension_numbers = #tpu.dot_dimension_numbers<[1], [0], [0], [1], [0, 0, 1, 1], [], []>} : vector<256x4xbf16>, vector<4x128xbf16>, vector<256x128xf32> -> vector<256x128xf32>
    %10 = arith.addf %6, %9 : vector<256x128xf32>
    %c0_10 = arith.constant 0 : index
    %c0_11 = arith.constant 0 : index
    %11 = vector.load %arg8[%c0_10, %c0_11] : memref<256x128xf32, #tpu.memory_space<vmem>>, vector<256x128xf32>
    tpu.vector_store %arg8[%c0_10, %c0_11], %10 {strides = array<i32>} : memref<256x128xf32, #tpu.memory_space<vmem>>, vector<256x128xf32>,
    %c0_12 = arith.constant 0 : index
    %c0_13 = arith.constant 0 : index
    %c1 = arith.constant 1 : index
    %c0_14 = arith.constant 0 : index
    %12 = vector.load %arg3[%c0_12, %c0_13, %c1, %c0_14] : memref<1x16x18x4xbf16, #tpu.memory_space<vmem>>, vector<1x16x16x4xbf16>
    %13 = vector.shape_cast %12 : vector<1x16x16x4xbf16> to vector<16x16x4xbf16>
    %14 = vector.shape_cast %13 : vector<16x16x4xbf16> to vector<256x4xbf16>
    %c0_15 = arith.constant 0 : index
    %c0_16 = arith.constant 0 : index
    %15 = vector.load %arg8[%c0_15, %c0_16] : memref<256x128xf32, #tpu.memory_space<vmem>>, vector<256x128xf32>
    %c0_17 = arith.constant 0 : index
    %c1_18 = arith.constant 1 : index
    %c0_19 = arith.constant 0 : index
    %c0_20 = arith.constant 0 : index
    %16 = vector.load %arg4[%c0_17, %c1_18, %c0_19, %c0_20] : memref<1x3x4x128xbf16, #tpu.memory_space<vmem>>, vector<1x1x4x128xbf16>
    %17 = vector.shape_cast %16 : vector<1x1x4x128xbf16> to vector<4x128xbf16>
    %cst_21 = arith.constant dense<0.000000e+00> : vector<256x128xf32>
    %18 = tpu.matmul %14, %17, %cst_21 {dimension_numbers = #tpu.dot_dimension_numbers<[1], [0], [0], [1], [0, 0, 1, 1], [], []>} : vector<256x4xbf16>, vector<4x128xbf16>, vector<256x128xf32> -> vector<256x128xf32>
    %19 = arith.addf %15, %18 : vector<256x128xf32>
    %c0_22 = arith.constant 0 : index
    %c0_23 = arith.constant 0 : index
    %20 = vector.load %arg8[%c0_22, %c0_23] : memref<256x128xf32, #tpu.memory_space<vmem>>, vector<256x128xf32>
    tpu.vector_store %arg8[%c0_22, %c0_23], %19 {strides = array<i32>} : memref<256x128xf32, #tpu.memory_space<vmem>>, vector<256x128xf32>,
    %c0_24 = arith.constant 0 : index
    %c0_25 = arith.constant 0 : index
    %c2 = arith.constant 2 : index
    %c0_26 = arith.constant 0 : index
    %21 = vector.load %arg3[%c0_24, %c0_25, %c2, %c0_26] : memref<1x16x18x4xbf16, #tpu.memory_space<vmem>>, vector<1x16x16x4xbf16>
    %22 = vector.shape_cast %21 : vector<1x16x16x4xbf16> to vector<16x16x4xbf16>
    %23 = vector.shape_cast %22 : vector<16x16x4xbf16> to vector<256x4xbf16>
    %c0_27 = arith.constant 0 : index
    %c0_28 = arith.constant 0 : index
    %24 = vector.load %arg8[%c0_27, %c0_28] : memref<256x128xf32, #tpu.memory_space<vmem>>, vector<256x128xf32>
    %c0_29 = arith.constant 0 : index
    %c2_30 = arith.constant 2 : index
    %c0_31 = arith.constant 0 : index
    %c0_32 = arith.constant 0 : index
    %25 = vector.load %arg4[%c0_29, %c2_30, %c0_31, %c0_32] : memref<1x3x4x128xbf16, #tpu.memory_space<vmem>>, vector<1x1x4x128xbf16>
    %26 = vector.shape_cast %25 : vector<1x1x4x128xbf16> to vector<4x128xbf16>
    %cst_33 = arith.constant dense<0.000000e+00> : vector<256x128xf32>
    %27 = tpu.matmul %23, %26, %cst_33 {dimension_numbers = #tpu.dot_dimension_numbers<[1], [0], [0], [1], [0, 0, 1, 1], [], []>} : vector<256x4xbf16>, vector<4x128xbf16>, vector<256x128xf32> -> vector<256x128xf32>
    %28 = arith.addf %24, %27 : vector<256x128xf32>
    %c0_34 = arith.constant 0 : index
    %c0_35 = arith.constant 0 : index
    %29 = vector.load %arg8[%c0_34, %c0_35] : memref<256x128xf32, #tpu.memory_space<vmem>>, vector<256x128xf32>
    tpu.vector_store %arg8[%c0_34, %c0_35], %28 {strides = array<i32>} : memref<256x128xf32, #tpu.memory_space<vmem>>, vector<256x128xf32>,
    %c2_i32 = arith.constant 2 : i32
    %30 = arith.cmpi eq, %arg2, %c2_i32 : i32
    %31 = arith.extui %30 : i1 to i32
    %c0_i32_36 = arith.constant 0 : i32
    %32 = arith.cmpi ne, %31, %c0_i32_36 : i32
    scf.if %32 {
      %c0_37 = arith.constant 0 : index
      %c0_38 = arith.constant 0 : index
      %33 = vector.load %arg8[%c0_37, %c0_38] : memref<256x128xf32, #tpu.memory_space<vmem>>, vector<256x128xf32>
      %c0_39 = arith.constant 0 : index
      %c0_40 = arith.constant 0 : index
      %34 = vector.load %arg5[%c0_39, %c0_40] : memref<1x128xf32, #tpu.memory_space<vmem>>, vector<1x128xf32>
      %35 = vector.broadcast %34 : vector<1x128xf32> to vector<256x128xf32>
      %36 = arith.mulf %33, %35 : vector<256x128xf32>
      %c0_41 = arith.constant 0 : index
      %c0_42 = arith.constant 0 : index
      %37 = vector.load %arg6[%c0_41, %c0_42] : memref<1x128xf32, #tpu.memory_space<vmem>>, vector<1x128xf32>
      %38 = vector.broadcast %37 : vector<1x128xf32> to vector<256x128xf32>
      %39 = arith.addf %36, %38 : vector<256x128xf32>
      %40 = arith.negf %39 : vector<256x128xf32>
      %41 = math.exp %40 : vector<256x128xf32>
      %cst_43 = arith.constant 1.000000e+00 : f32
      %42 = vector.broadcast %cst_43 : f32 to vector<256x128xf32>
      %43 = arith.addf %42, %41 : vector<256x128xf32>
      %44 = arith.divf %42, %43 : vector<256x128xf32>
      %45 = arith.mulf %39, %44 : vector<256x128xf32>
      %c0_44 = arith.constant 0 : index
      %c0_45 = arith.constant 0 : index
      %46 = vector.load %arg7[%c0_44, %c0_45] : memref<256x128xf32, #tpu.memory_space<vmem>>, vector<256x128xf32>
      tpu.vector_store %arg7[%c0_44, %c0_45], %45 {strides = array<i32>} : memref<256x128xf32, #tpu.memory_space<vmem>>, vector<256x128xf32>,
    } else {
    }
    return
  }
  func.func @transform_0(%arg0: i32, %arg1: i32, %arg2: i32) -> (i32, i32, i32, i32) {
    %c0_i32 = arith.constant 0 : i32
    %c0_i32_0 = arith.constant 0 : i32
    %c0_i32_1 = arith.constant 0 : i32
    return %arg2, %arg0, %c0_i32, %c0_i32_0 : i32, i32, i32, i32
  }
  func.func @transform_1(%arg0: i32, %arg1: i32, %arg2: i32) -> (i32, i32, i32, i32) {
    %c0_i32 = arith.constant 0 : i32
    %c0_i32_0 = arith.constant 0 : i32
    %c0_i32_1 = arith.constant 0 : i32
    return %arg2, %c0_i32, %c0_i32_0, %arg1 : i32, i32, i32, i32
  }
  func.func @transform_2(%arg0: i32, %arg1: i32, %arg2: i32) -> (i32, i32) {
    %c0_i32 = arith.constant 0 : i32
    %c0_i32_0 = arith.constant 0 : i32
    return %c0_i32, %arg1 : i32, i32
  }
  func.func @transform_3(%arg0: i32, %arg1: i32, %arg2: i32) -> (i32, i32) {
    %c0_i32 = arith.constant 0 : i32
    %c0_i32_0 = arith.constant 0 : i32
    return %c0_i32, %arg1 : i32, i32
  }
  func.func @transform_4(%arg0: i32, %arg1: i32, %arg2: i32) -> (i32, i32) {
    %c0_i32 = arith.constant 0 : i32
    return %arg0, %arg1 : i32, i32
  }
}

</mosaic_0001>

<bundles_post_ra>
// kernel: conv_bn_silu.1
= control target key start
LH: loop header
LB: loop body
LE: loop exit
PB: predicated region body
PF: predicated region fallthrough
CT: control target
= control target key end

     0   :  { %s3205_s15 = smov 0   ;;  %s3207_s16 = smov 0   ;;  %s3891_s0 = inlined_call_operand.vmem [shape: bf16[3,32,18,4], index: 0, kind: input, shape index: {}]   ;;  %s3892_s1 = inlined_call_operand.vmem [shape: bf16[3,3,4,128], index: 1, kind: input, shape index: {}]   ;;  %s3893_s2 = inlined_call_operand.vmem [shape: f32[1,128], index: 2, kind: input, shape index: {}]   ;;  %s3894_s3 = inlined_call_operand.vmem [shape: f32[1,128], index: 3, kind: input, shape index: {}]   ;;  %s3895_s4 = inlined_call_operand.vmem [shape: f32[512,128], index: 4, kind: output, shape index: {}]  }
   0x1   :  { %s3209_s17 = smov 0   ;;  %s3211_s18 = smov 0  }
   0x2   :  { %s3213_s19 = smov 0  }
   0x3 LB: > { %s26_s20 = sadd.s32 1, %s3169_s17  ;;  %s33_s21 = sadd.s32 1, %s3173_s18  ;;  %s3177_s19 = sphi %s3213_s19, %s14_s19   ;;  %s3173_s18 = sphi %s3211_s18, %s3903_s18   ;;  %s3169_s17 = sphi %s3209_s17, %s3902_s17   ;;  %s3165_s16 = sphi %s3207_s16, %s3901_s16   ;;  %s3161_s15 = sphi %s3205_s15, %s3900_s15  }
   0x4   : > { %p27_p0 = scmp.ge.s32.totalorder %s26_s20, 3  ;;  %p2634_p1 = scmp.ge.s32.totalorder %s3177_s19, 1 }
   0x5   : > { %p222_p2 = scmp.lt.s32.totalorder %s3177_s19, 7 }
   0x6   : > { %s3905_s20 = smov (%p27_p0, %s26_s20), 0  ;;  %s3907_s21 = smov (!%p27_p0, %s33_s21), %s3173_s18 }
   0x7   : > { %p223_p3 = pnand %p2634_p1, %p222_p2  ;;  %p35_p4 = scmp.ge.s32.totalorder %s3907_s21, 2 }
   0x8   : > { %s2635_s22 = sshll.u32 (!%p223_p3), %s3165_s16, 4  ;;  %p271_p5 = scmp.lt.s32.totalorder (!%p223_p3), %s3161_s15, 2 }
   0x9   : > { %s3909_s21 = smov (%p35_p4, %s3907_s21), 0  ;;  %226 = sbr.rel (%p223_p3) target bundleno = 439 (0x1b7), region = 36 }
   0xa   : > { %p273_p6 = scmp.lt.s32.totalorder (!%p223_p3), %s2635_s22, 31  ;;  %s2638_s23 = sshll.u32 (!%p223_p3), %s3165_s16, 5 }
   0xb   : > { %p296_p7 = scmp.lt.s32.totalorder (!%p223_p3), %s2638_s23, 63  ;;  %p2640_p8 = scmp.ne.s32.totalorder (!%p223_p3), %s3161_s15, 0 }
   0xe   : > { %s272_s24 = scalar_select %p271_p5, %s3161_s15, 2 }
   0xf   : > { %s3911_s22 = smov (!%p273_p6, %s2635_s22), 31  ;;  %s3913_s23 = smov (!%p296_p7, %s2638_s23), 63 }
  0x10   : > { %s2952_s25 = smul.u32 96, %s272_s24  ;;  %s2639_s10 = sshll.u32 %s3913_s23, 3 }
  0x11   : > { %s2951_s26 = smul.u32 3, %s3911_s22  ;;  %s3256_s13 = scalar_lea.vmem %s3895_s4, %s2639_s10 }
  0x12   : > { %s2953_s27 = smul.u32 6, %s272_s24 }
  0x13   : > { %s277_s28 = sadd.s32 %s2952_s25, %s2951_s26  ;;  %308 = sbr.rel (%p2640_p8) target bundleno = 41 (0x29), region = 40 }
  0x14   : > { %s2636_s29 = sshll.u32 %s277_s28, 2  ;;  %s3246_s6 = scalar_lea.vmem %s3892_s1, %s2953_s27 }
  0x15   : > { %s3251_s9 = scalar_lea.vmem %s3891_s0, %s2636_s29 }
  0x18   : > { %v3179_v0 = vmov 0.0  }
  0x19   : > { %309 = vst [vmem:[#allocation2 + $0xb0] sm:$0xff] %v3179_v0  ;;  %310 = vst [vmem:[#allocation2] sm:$0xff] %v3179_v0 }
  0x1a   : > { %311 = vst [vmem:[#allocation2 + $0xd8] sm:$0xff] %v3179_v0  ;;  %312 = vst [vmem:[#allocation2 + $0x18] sm:$0xff] %v3179_v0 }
  0x1b   : > { %313 = vst [vmem:[#allocation2 + $0x50] sm:$0xff] %v3179_v0  ;;  %314 = vst [vmem:[#allocation2 + $0x68] sm:$0xff] %v3179_v0 }
  0x1c   : > { %315 = vst [vmem:[#allocation2 + $0x30] sm:$0xff] %v3179_v0  ;;  %316 = vst [vmem:[#allocation2 + $0x48] sm:$0xff] %v3179_v0 }
  0x1d   : > { %317 = vst [vmem:[#allocation2 + $0x80] sm:$0xff] %v3179_v0  ;;  %318 = vst [vmem:[#allocation2 + $0x88] sm:$0xff] %v3179_v0 }
  0x1e   : > { %319 = vst [vmem:[#allocation2 + $0xe8] sm:$0xff] %v3179_v0  ;;  %320 = vst [vmem:[#allocation2 + $0xb8] sm:$0xff] %v3179_v0 }
  0x1f   : > { %321 = vst [vmem:[#allocation2 + $0x60] sm:$0xff] %v3179_v0  ;;  %322 = vst [vmem:[#allocation2 + $0xf0] sm:$0xff] %v3179_v0 }
  0x20   : > { %323 = vst [vmem:[#allocation2 + $0x8] sm:$0xff] %v3179_v0  ;;  %324 = vst [vmem:[#allocation2 + $0x78] sm:$0xff] %v3179_v0 }
  0x21   : > { %325 = vst [vmem:[#allocation2 + $0x38] sm:$0xff] %v3179_v0  ;;  %326 = vst [vmem:[#allocation2 + $0x58] sm:$0xff] %v3179_v0 }
  0x22   : > { %327 = vst [vmem:[#allocation2 + $0x40] sm:$0xff] %v3179_v0  ;;  %328 = vst [vmem:[#allocation2 + $0xc8] sm:$0xff] %v3179_v0 }
  0x23   : > { %329 = vst [vmem:[#allocation2 + $0xe0] sm:$0xff] %v3179_v0  ;;  %330 = vst [vmem:[#allocation2 + $0x90] sm:$0xff] %v3179_v0 }
  0x24   : > { %331 = vst [vmem:[#allocation2 + $0x70] sm:$0xff] %v3179_v0  ;;  %332 = vst [vmem:[#allocation2 + $0xc0] sm:$0xff] %v3179_v0 }
  0x25   : > { %333 = vst [vmem:[#allocation2 + $0xa8] sm:$0xff] %v3179_v0  ;;  %334 = vst [vmem:[#allocation2 + $0xd0] sm:$0xff] %v3179_v0 }
  0x26   : > { %335 = vst [vmem:[#allocation2 + $0x10] sm:$0xff] %v3179_v0  ;;  %336 = vst [vmem:[#allocation2 + $0x28] sm:$0xff] %v3179_v0 }
  0x27   : > { %337 = vst [vmem:[#allocation2 + $0xa0] sm:$0xff] %v3179_v0  ;;  %338 = vst [vmem:[#allocation2 + $0xf8] sm:$0xff] %v3179_v0 }
  0x28   : > { %339 = vst [vmem:[#allocation2 + $0x20] sm:$0xff] %v3179_v0  ;;  %340 = vst [vmem:[#allocation2 + $0x98] sm:$0xff] %v3179_v0 }
  0x29 PF: > { %v405_v1 = vld [vmem:[%s3246_s6] sm:$0x3]  ;;  %vm535_vm0 = vcmask 1041408   ;;  %vm486_vm1 = vcmask 31744   ;;  %v2996_v4 = vld [vmem:[%s3251_s9 + $0x6c] sm:$0xff]   ;;  %v2999_v9 = vld [vmem:[%s3251_s9 + $0x78] sm:$0xff]  }
  0x2a   : > { %v2995_v2 = vld [vmem:[%s3251_s9 + $0x60] sm:$0xff]   ;;  %2948 = vmatprep.subr.msk.bf16.mxu1 %vm535_vm0, %v405_v1  ;;  %v537_v3 = vsel %vm535_vm0, %v405_v1, 0  ;;  %2947 = vmatprep.subr.msk.bf16.mxu0 %vm535_vm0, %v405_v1  ;;  %v2998_v8 = vld [vmem:[%s3251_s9 + $0xc] sm:$0xff]   ;;  %v3001_v13 = vld [vmem:[%s3251_s9 + $0x18] sm:$0xff]   ;;  %vm1653_vm2 = vcmask 1042432   ;;  %vm1654_vm3 = vcmask 1046532  }
  0x2b   : > { %2946 = vmatpush3.bf16.msra.mxu1 %v537_v3  ;;  %2861 = vmatprep.mubr.msk.bf16.mxu1 %vm486_vm1, %v2995_v2  ;;  %v2673_v5 = vld [vmem:[%s3246_s6 + $0x2] sm:$0x3]  ;;  %v3000_v10 = vld [vmem:[%s3251_s9 + $0x84] sm:$0xff]   ;;  %v3003_v15 = vld [vmem:[%s3251_s9 + $0x90] sm:$0xff]   ;;  %vm812_vm4 = vsmask.f32 3328 }
  0x2c   : > { %2949 = vmatprep.subr.msk.bf16.mxu1 %vm535_vm0, %v2673_v5  ;;  %v1330_v6 = vsel %vm535_vm0, %v2673_v5, 0  ;;  %2844 = vmatpush3.bf16.msra.mxu0 %v537_v3  ;;  %v2997_v7 = vld [vmem:[%s3251_s9] sm:$0xff]   ;;  %v3005_v16 = vld [vmem:[%s3251_s9 + $0x30] sm:$0xff]   ;;  %v3007_v19 = vld [vmem:[%s3251_s9 + $0xa8] sm:$0xff]   ;;  %vm813_vm5 = vsmask.f32 7440 }
  0x2d   : > { %2845 = vmatprep.mubr.msk.bf16.mxu0 %vm486_vm1, %v2997_v7  ;;  %v2722_v11 = vld [vmem:[%s3246_s6 + $0x4] sm:$0x3]  ;;  %v3004_v17 = vld [vmem:[%s3251_s9 + $0x9c] sm:$0xff]   ;;  %v3009_v20 = vld [vmem:[%s3251_s9 + $0x48] sm:$0xff]   ;;  %p2755_p9 = scmp.ne.s32.totalorder %s3161_s15, 2 }
  0x2e   : > { %2862 = vmatmul.mubr.msk.bf16.vlgmr.msra.gmra.mxu1 %vm486_vm1, %v2996_v4  ;;  %2950 = vmatprep.subr.msk.bf16.mxu0 %vm535_vm0, %v2722_v11  ;;  %v1899_v12 = vsel %vm535_vm0, %v2722_v11, 0  ;;  %v3002_v14 = vld [vmem:[%s3251_s9 + $0x24] sm:$0xff]   ;;  %v3006_v18 = vld [vmem:[%s3251_s9 + $0x3c] sm:$0xff]   ;;  %v767_v28 = vld [vmem:[%s3251_s9 + $0xc] sm:$0xf] }
  0x2f   : > { %2878 = vmatpush3.bf16.msra.mxu1 %v1330_v6  ;;  %2846 = vmatmul.mubr.msk.bf16.vlgmr.msra.gmra.mxu0 %vm486_vm1, %v2998_v8  ;;  %v764_v21 = vld [vmem:[%s3251_s9] sm:$0xf]  ;;  %v765_v22 = vld [vmem:[%s3251_s9 + $0x4] sm:$0xf]  ;;  %v766_v23 = vld [vmem:[%s3251_s9 + $0x8] sm:$0x1] }
  0x30   : > { %2865 = vmatprep.mubr.msk.bf16.mxu1 %vm486_vm1, %v2999_v9  ;;  %2912 = vmatpush3.bf16.msra.mxu0 %v1899_v12  ;;  %v816_v24 = vshrl.u32 %v764_v21, 16  ;;  %v819_v25 = vshll.u32 %v764_v21, 16  ;;  %v825_v26 = vshll.u32 %v765_v22, 16  ;;  %v829_v27 = vshrl.u32 %v765_v22, 16  ;;  %v768_v30 = vld [vmem:[%s3251_s9 + $0x10] sm:$0xf]  ;;  %vm3309_vm6 = vmor %vm1653_vm2, %vm1654_vm3 }
  0x31   : > { %2849 = vmatprep.mubr.msk.bf16.mxu0 %vm486_vm1, %v3001_v13  ;;  %v835_v29 = vshll.u32 %v766_v23, 16  ;;  %v769_v31 = vld [vmem:[%s3251_s9 + $0x14] sm:$0x1]  ;;  %v840_v32 = vshrl.u32 %v767_v28, 16  ;;  %v1557_v37 = vld [vmem:[%s3251_s9] sm:$0xe]  ;;  %vm3316_vm7 = vmor %vm812_vm4, %vm813_vm5 }
  0x32   : > { %v818_v33 = vrot.slane %v816_v24, 4  ;;  %v821_v34 = vrot.slane %v819_v25, 5  ;;  %v827_v35 = vrot.slane %v825_v26, 5  ;;  %v831_v36 = vrot.slane %v829_v27, 4  ;;  %v1558_v42 = vld [vmem:[%s3251_s9 + $0x4] sm:$0xf] }
  0x33   : > { %v837_v38 = vrot.slane %v835_v29, 5  ;;  %v842_v39 = vrot.slane %v840_v32, 4  ;;  %v843_v40 = vshll.u32 %v767_v28, 16  ;;  %v849_v41 = vshll.u32 %v768_v30, 16  ;;  %v3008_v43 = vld [vmem:[%s3251_s9 + $0xb4] sm:$0xff]  }
  0x34   : > { %v822_v44 = vor.u32 %v821_v34, %v818_v33  ;;  %v832_v45 = vor.u32 %v831_v36, %v827_v35  ;;  %v853_v46 = vshrl.u32 %v768_v30, 16  ;;  %v859_v47 = vshll.u32 %v769_v31, 16  ;;  %v1559_v48 = vld [vmem:[%s3251_s9 + $0x8] sm:$0x1]  ;;  %v3010_v50 = vld [vmem:[%s3251_s9 + $0x54] sm:$0xff]  }
  0x35   : > { %v845_v52 = vrot.slane %v843_v40, 5  ;;  %v851_v53 = vrot.slane %v849_v41, 5  ;;  %v2706_v54 = vrot.slane %v1557_v37, 9  ;;  %v1658_v55 = vrot.slane %v1558_v42, 5  ;;  %v1560_v56 = vld [vmem:[%s3251_s9 + $0xc] sm:$0xe] }
  0x36   : > { %2866 = vmatmul.mubr.msk.bf16.gmra.mxu1 %vm486_vm1, %v3000_v10  ;;  %v823_v57 = vrot.slane %v822_v44, 4  ;;  %v833_v58 = vrot.slane %v832_v45, 4  ;;  %v855_v59 = vrot.slane %v853_v46, 4  ;;  %v861_v60 = vrot.slane %v859_v47, 5  ;;  %v1561_v61 = vld [vmem:[%s3251_s9 + $0x10] sm:$0xf] }
  0x37   : > { %2850 = vmatmul.mubr.msk.bf16.gmra.mxu0 %vm486_vm1, %v3002_v14  ;;  %2869 = vmatprep.mubr.msk.bf16.mxu1 %vm486_vm1, %v3003_v15  ;;  %v846_v62 = vor.u32 %v845_v52, %v842_v39  ;;  %v1659_v63 = vsel %vm3309_vm6, %v2706_v54, %v1658_v55  ;;  %v1660_v0 = vrot.slane %v1658_v55, 4  ;;  %v1661_v1 = vrot.slane %v1559_v48, 5  ;;  %v1562_v2 = vld [vmem:[%s3251_s9 + $0x14] sm:$0x1]  ;;  %v770_v3 = vld [vmem:[%s3251_s9 + $0x18] sm:$0xf] }
  0x38   : > { %2853 = vmatprep.mubr.msk.bf16.mxu0 %vm486_vm1, %v3005_v16  ;;  %v828_v4 = vsel %vm3316_vm7, %v823_v57, %v827_v35  ;;  %v838_v5 = vsel %vm3316_vm7, %v833_v58, %v837_v38  ;;  %v856_v6 = vor.u32 %v855_v59, %v851_v53  ;;  %v2707_v7 = vrot.slane %v1560_v56, 9  ;;  %v771_v12 = vld [vmem:[%s3251_s9 + $0x1c] sm:$0xf]  ;;  %v772_v16 = vld [vmem:[%s3251_s9 + $0x20] sm:$0x1] }
  0x39   : > { %v2674_v8 = vcombine.low %v828_v4, %v838_v5  ;;  %v847_v9 = vrot.slane %v846_v62, 4  ;;  %v1662_v10 = vsel %vm3309_vm6, %v1660_v0, %v1661_v1  ;;  %v1665_v11 = vrot.slane %v1561_v61, 5  ;;  %v773_v22 = vld [vmem:[%s3251_s9 + $0x24] sm:$0xf]  ;;  %v774_v27 = vld [vmem:[%s3251_s9 + $0x28] sm:$0xf] }
  0x3a   : > { %v857_v13 = vrot.slane %v856_v6, 4  ;;  %v2723_v14 = vcombine.low %v1659_v63, %v1662_v10  ;;  %v1668_v15 = vrot.slane %v1562_v2, 5  ;;  %v867_v21 = vshll.u32 %v770_v3, 16  ;;  %v775_v32 = vld [vmem:[%s3251_s9 + $0x2c] sm:$0x1] }
  0x3b   : > { %v873_v25 = vshll.u32 %v771_v12, 16  ;;  %v877_v26 = vshrl.u32 %v771_v12, 16  ;;  %v883_v31 = vshll.u32 %v772_v16, 16  ;;  %v1563_v33 = vld [vmem:[%s3251_s9 + $0x18] sm:$0xe]  ;;  %v888_v37 = vshrl.u32 %v773_v22, 16 }
  0x3c   : > { %v862_v23 = vsel %vm3316_vm7, %v857_v13, %v861_v60  ;;  %v869_v30 = vrot.slane %v867_v21, 5  ;;  %v1564_v38 = vld [vmem:[%s3251_s9 + $0x1c] sm:$0xf]  ;;  %v891_v41 = vshll.u32 %v773_v22, 16  ;;  %v897_v42 = vshll.u32 %v774_v27, 16 }
  0x3d   : > { %v875_v35 = vrot.slane %v873_v25, 5  ;;  %v879_v36 = vrot.slane %v877_v26, 4  ;;  %v885_v40 = vrot.slane %v883_v31, 5  ;;  %v890_v45 = vrot.slane %v888_v37, 4  ;;  %v1566_v48 = vld [vmem:[%s3251_s9 + $0x24] sm:$0xe] }
  0x3e   : > { %2870 = vmatmul.mubr.msk.bf16.gmra.mxu1 %vm486_vm1, %v3004_v17  ;;  %v864_v17 = vshrl.u32 %v770_v3, 16  ;;  %v901_v46 = vshrl.u32 %v774_v27, 16  ;;  %v907_v47 = vshll.u32 %v775_v32, 16  ;;  %v893_v52 = vrot.slane %v891_v41, 5  ;;  %v1567_v55 = vld [vmem:[%s3251_s9 + $0x28] sm:$0xf] }
  0x3f   : > { %2854 = vmatmul.mubr.msk.bf16.gmra.mxu0 %vm486_vm1, %v3006_v18  ;;  %2873 = vmatprep.mubr.msk.bf16.mxu1 %vm486_vm1, %v3007_v19  ;;  %v852_v18 = vsel %vm3316_vm7, %v847_v9, %v851_v53  ;;  %v1666_v19 = vsel %vm3309_vm6, %v2707_v7, %v1665_v11  ;;  %v880_v44 = vor.u32 %v879_v36, %v875_v35  ;;  %v899_v53 = vrot.slane %v897_v42, 5  ;;  %v1568_v60 = vld [vmem:[%s3251_s9 + $0x2c] sm:$0x1]  ;;  %v776_v1 = vld [vmem:[%s3251_s9 + $0x30] sm:$0xf] }
  0x40   : > { %2857 = vmatprep.mubr.msk.bf16.mxu0 %vm486_vm1, %v3009_v20  ;;  %v1667_v20 = vrot.slane %v1665_v11, 4  ;;  %v866_v24 = vrot.slane %v864_v17, 4  ;;  %v2675_v28 = vcombine.low %v852_v18, %v862_v23  ;;  %v2708_v54 = vrot.slane %v1563_v33, 9  ;;  %v777_v10 = vld [vmem:[%s3251_s9 + $0x34] sm:$0xf] }
  0x41   : > { %v881_v56 = vrot.slane %v880_v44, 4  ;;  %v903_v57 = vrot.slane %v901_v46, 4  ;;  %v909_v58 = vrot.slane %v907_v47, 5  ;;  %v1672_v59 = vrot.slane %v1564_v38, 5  ;;  %v778_v13 = vld [vmem:[%s3251_s9 + $0x38] sm:$0x1] }
  0x42   : > { %v1669_v29 = vsel %vm3309_vm6, %v1667_v20, %v1668_v15  ;;  %v870_v39 = vor.u32 %v869_v30, %v866_v24  ;;  %v894_v62 = vor.u32 %v893_v52, %v890_v45  ;;  %v2709_v0 = vrot.slane %v1566_v48, 9  ;;  %v779_v20 = vld [vmem:[%s3251_s9 + $0x3c] sm:$0xf]  ;;  %v780_v25 = vld [vmem:[%s3251_s9 + $0x40] sm:$0xf] }
  0x43   : > { %v2724_v34 = vcombine.low %v1666_v19, %v1669_v29  ;;  %v886_v2 = vsel %vm3316_vm7, %v881_v56, %v885_v40  ;;  %v904_v3 = vor.u32 %v903_v57, %v899_v53  ;;  %v1673_v4 = vsel %vm3309_vm6, %v2708_v54, %v1672_v59  ;;  %v781_v30 = vld [vmem:[%s3251_s9 + $0x44] sm:$0x1]  ;;  %v1569_v31 = vld [vmem:[%s3251_s9 + $0x30] sm:$0xe]  ;;  %v1570_v36 = vld [vmem:[%s3251_s9 + $0x34] sm:$0xf] }
  0x44   : > { %v1674_v5 = vrot.slane %v1672_v59, 4  ;;  %v895_v7 = vrot.slane %v894_v62, 4  ;;  %v1682_v9 = vrot.slane %v1568_v60, 5  ;;  %v915_v15 = vshll.u32 %v776_v1, 16  ;;  %v1571_v37 = vld [vmem:[%s3251_s9 + $0x38] sm:$0x1] }
  0x45   : > { %v905_v11 = vrot.slane %v904_v3, 4  ;;  %v921_v24 = vshll.u32 %v777_v10, 16  ;;  %v931_v29 = vshll.u32 %v778_v13, 16  ;;  %v939_v40 = vshll.u32 %v779_v20, 16  ;;  %v1572_v42 = vld [vmem:[%s3251_s9 + $0x3c] sm:$0xe] }
  0x46   : > { %2874 = vmatmul.mubr.msk.bf16.gmra.mxu1 %vm486_vm1, %v3008_v43  ;;  %v1565_v43 = vld [vmem:[%s3251_s9 + $0x20] sm:$0x1]  ;;  %v900_v16 = vsel %vm3316_vm7, %v895_v7, %v899_v53  ;;  %v917_v23 = vrot.slane %v915_v15, 5  ;;  %v945_v41 = vshll.u32 %v780_v25, 16  ;;  %v949_v45 = vshrl.u32 %v780_v25, 16 }
  0x47   : > { %2858 = vmatmul.mubr.msk.bf16.gmra.mxu0 %vm486_vm1, %v3010_v50  ;;  %2879 = vmatprep.mubr.msk.bf16.mxu1 %vm486_vm1, %v2674_v8  ;;  %v871_v50 = vrot.slane %v870_v39, 4  ;;  %v1675_v63 = vrot.slane %v1565_v43, 5  ;;  %v1679_v8 = vrot.slane %v1567_v55, 5  ;;  %v910_v21 = vsel %vm3316_vm7, %v905_v11, %v909_v58  ;;  %v1573_v47 = vld [vmem:[%s3251_s9 + $0x40] sm:$0xf] }
  0x48   : > { %2913 = vmatprep.mubr.msk.bf16.mxu0 %vm486_vm1, %v2723_v14  ;;  %v912_v14 = vshrl.u32 %v776_v1, 16  ;;  %v2677_v26 = vcombine.low %v900_v16, %v910_v21  ;;  %v933_v39 = vrot.slane %v931_v29, 5  ;;  %v955_v46 = vshll.u32 %v781_v30, 16  ;;  %v1574_v54 = vld [vmem:[%s3251_s9 + $0x44] sm:$0x1] }
  0x49   : > { %v876_v61 = vsel %vm3316_vm7, %v871_v50, %v875_v35  ;;  %v1676_v12 = vsel %vm3309_vm6, %v1674_v5, %v1675_v63  ;;  %v1680_v18 = vsel %vm3309_vm6, %v2709_v0, %v1679_v8  ;;  %v1681_v19 = vrot.slane %v1679_v8, 4  ;;  %v782_v59 = vld [vmem:[%s3251_s9 + $0x48] sm:$0xf]  ;;  %v783_v7 = vld [vmem:[%s3251_s9 + $0x4c] sm:$0xf] }
  0x4a   : > { %v2676_v6 = vcombine.low %v876_v61, %v886_v2  ;;  %v2725_v17 = vcombine.low %v1673_v4, %v1676_v12  ;;  %v914_v22 = vrot.slane %v912_v14, 4  ;;  %v936_v35 = vshrl.u32 %v779_v20, 16  ;;  %v784_v13 = vld [vmem:[%s3251_s9 + $0x50] sm:$0x1]  ;;  %v785_v14 = vld [vmem:[%s3251_s9 + $0x54] sm:$0xf] }
  0x4b   : > { %v1683_v27 = vsel %vm3309_vm6, %v1681_v19, %v1682_v9  ;;  %v941_v50 = vrot.slane %v939_v40, 5  ;;  %v947_v52 = vrot.slane %v945_v41, 5  ;;  %v2710_v53 = vrot.slane %v1569_v31, 9  ;;  %v1575_v29 = vld [vmem:[%s3251_s9 + $0x48] sm:$0xe] }
  0x4c   : > { %v2726_v32 = vcombine.low %v1680_v18, %v1683_v27  ;;  %v918_v33 = vor.u32 %v917_v23, %v914_v22  ;;  %v938_v44 = vrot.slane %v936_v35, 4  ;;  %v951_v56 = vrot.slane %v949_v45, 4  ;;  %v786_v23 = vld [vmem:[%s3251_s9 + $0x58] sm:$0xf]  ;;  %v787_v27 = vld [vmem:[%s3251_s9 + $0x5c] sm:$0x1] }
  0x4d   : > { %v957_v57 = vrot.slane %v955_v46, 5  ;;  %v1686_v58 = vrot.slane %v1570_v36, 5  ;;  %v1689_v62 = vrot.slane %v1571_v37, 5  ;;  %v2711_v63 = vrot.slane %v1572_v42, 9 }
  0x4e   : > { %2880 = vmatmul.mubr.msk.bf16.vlgmr.msra.gmra.mxu1 %vm486_vm1, %v2675_v28  ;;  %v925_v28 = vshrl.u32 %v777_v10, 16  ;;  %v919_v43 = vrot.slane %v918_v33, 4  ;;  %v942_v61 = vor.u32 %v941_v50, %v938_v44  ;;  %v952_v0 = vor.u32 %v951_v56, %v947_v52 }
  0x4f   : > { %2914 = vmatmul.mubr.msk.bf16.vlgmr.msra.gmra.mxu0 %vm486_vm1, %v2724_v34  ;;  %2883 = vmatprep.mubr.msk.bf16.mxu1 %vm486_vm1, %v2676_v6  ;;  %v923_v34 = vrot.slane %v921_v24, 5  ;;  %v1687_v1 = vsel %vm3309_vm6, %v2710_v53, %v1686_v58  ;;  %v1688_v2 = vrot.slane %v1686_v58, 4  ;;  %v1693_v3 = vrot.slane %v1573_v47, 5 }
  0x50   : > { %2917 = vmatprep.mubr.msk.bf16.mxu0 %vm486_vm1, %v2725_v17  ;;  %v927_v38 = vrot.slane %v925_v28, 4  ;;  %v943_v5 = vrot.slane %v942_v61, 4  ;;  %v1696_v6 = vrot.slane %v1574_v54, 5  ;;  %v960_v8 = vshrl.u32 %v782_v59, 16  ;;  %v788_v61 = vld [vmem:[%s3251_s9 + $0x60] sm:$0xf] }
  0x51   : > { %v924_v55 = vsel %vm3316_vm7, %v919_v43, %v923_v34  ;;  %v953_v10 = vrot.slane %v952_v0, 4  ;;  %v1690_v11 = vsel %vm3309_vm6, %v1688_v2, %v1689_v62  ;;  %v1694_v12 = vsel %vm3309_vm6, %v2711_v63, %v1693_v3  ;;  %v1577_v43 = vld [vmem:[%s3251_s9 + $0x50] sm:$0x1] }
  0x52   : > { %v928_v48 = vor.u32 %v927_v38, %v923_v34  ;;  %v948_v15 = vsel %vm3316_vm7, %v943_v5, %v947_v52  ;;  %v2727_v16 = vcombine.low %v1687_v1, %v1690_v11  ;;  %v1695_v17 = vrot.slane %v1693_v3, 4  ;;  %v1576_v34 = vld [vmem:[%s3251_s9 + $0x4c] sm:$0xf] }
  0x53   : > { %v962_v18 = vrot.slane %v960_v8, 4  ;;  %v958_v19 = vsel %vm3316_vm7, %v953_v10, %v957_v57  ;;  %v963_v20 = vshll.u32 %v782_v59, 16  ;;  %v969_v21 = vshll.u32 %v783_v7, 16  ;;  %v790_v10 = vld [vmem:[%s3251_s9 + $0x68] sm:$0x1] }
  0x54   : > { %v929_v60 = vrot.slane %v928_v48, 4  ;;  %v973_v22 = vshrl.u32 %v783_v7, 16  ;;  %v2679_v24 = vcombine.low %v948_v15, %v958_v19  ;;  %v1697_v25 = vsel %vm3309_vm6, %v1695_v17, %v1696_v6  ;;  %v1578_v48 = vld [vmem:[%s3251_s9 + $0x54] sm:$0xe]  ;;  %v789_v6 = vld [vmem:[%s3251_s9 + $0x64] sm:$0xf] }
  0x55   : > { %v984_v28 = vshrl.u32 %v785_v14, 16  ;;  %v2728_v30 = vcombine.low %v1694_v12, %v1697_v25  ;;  %v965_v31 = vrot.slane %v963_v20, 5  ;;  %v987_v37 = vshll.u32 %v785_v14, 16 }
  0x56   : > { %2884 = vmatmul.mubr.msk.bf16.gmra.mxu1 %vm486_vm1, %v2677_v26  ;;  %v934_v4 = vsel %vm3316_vm7, %v929_v60, %v933_v39  ;;  %v979_v26 = vshll.u32 %v784_v13, 16  ;;  %v975_v33 = vrot.slane %v973_v22, 4  ;;  %v993_v38 = vshll.u32 %v786_v23, 16  ;;  %v1580_v60 = vld [vmem:[%s3251_s9 + $0x5c] sm:$0x1] }
  0x57   : > { %2918 = vmatmul.mubr.msk.bf16.gmra.mxu0 %vm486_vm1, %v2726_v32  ;;  %v2678_v9 = vcombine.low %v924_v55, %v934_v4  ;;  %v971_v32 = vrot.slane %v969_v21, 5  ;;  %v986_v36 = vrot.slane %v984_v28, 4  ;;  %v966_v39 = vor.u32 %v965_v31, %v962_v18  ;;  %v1579_v55 = vld [vmem:[%s3251_s9 + $0x58] sm:$0xf]  ;;  %v792_v21 = vld [vmem:[%s3251_s9 + $0x70] sm:$0xf] }
  0x58   : > { %2921 = vmatprep.mubr.msk.bf16.mxu0 %vm486_vm1, %v2727_v16  ;;  %v981_v35 = vrot.slane %v979_v26, 5  ;;  %v997_v41 = vshrl.u32 %v786_v23, 16  ;;  %v1003_v42 = vshll.u32 %v787_v27, 16  ;;  %v989_v44 = vrot.slane %v987_v37, 5  ;;  %v791_v16 = vld [vmem:[%s3251_s9 + $0x6c] sm:$0xf] }
  0x59   : > { %2887 = vmatprep.mubr.msk.bf16.mxu1 %vm486_vm1, %v2678_v9  ;;  %v976_v40 = vor.u32 %v975_v33, %v971_v32  ;;  %v995_v45 = vrot.slane %v993_v38, 5  ;;  %v2712_v46 = vrot.slane %v1575_v29, 9  ;;  %v1700_v47 = vrot.slane %v1576_v34, 5  ;;  %v793_v26 = vld [vmem:[%s3251_s9 + $0x74] sm:$0x1] }
  0x5a   : > { %v967_v50 = vrot.slane %v966_v39, 4  ;;  %v999_v53 = vrot.slane %v997_v41, 4  ;;  %v1005_v54 = vrot.slane %v1003_v42, 5  ;;  %v990_v56 = vor.u32 %v989_v44, %v986_v36  ;;  %v1581_v27 = vld [vmem:[%s3251_s9 + $0x60] sm:$0xe] }
  0x5b   : > { %v977_v52 = vrot.slane %v976_v40, 4  ;;  %v1701_v57 = vsel %vm3309_vm6, %v2712_v46, %v1700_v47  ;;  %v1702_v58 = vrot.slane %v1700_v47, 4  ;;  %v1703_v59 = vrot.slane %v1577_v43, 5  ;;  %v1583_v37 = vld [vmem:[%s3251_s9 + $0x68] sm:$0x1] }
  0x5c   : > { %v972_v62 = vsel %vm3316_vm7, %v967_v50, %v971_v32  ;;  %v1000_v0 = vor.u32 %v999_v53, %v995_v45  ;;  %v2713_v1 = vrot.slane %v1578_v48, 9  ;;  %v991_v3 = vrot.slane %v990_v56, 4  ;;  %v1582_v32 = vld [vmem:[%s3251_s9 + $0x64] sm:$0xf]  ;;  %v1584_v42 = vld [vmem:[%s3251_s9 + $0x6c] sm:$0xe] }
  0x5d   : > { %v982_v63 = vsel %vm3316_vm7, %v977_v52, %v981_v35  ;;  %v1704_v4 = vsel %vm3309_vm6, %v1702_v58, %v1703_v59  ;;  %v1707_v5 = vrot.slane %v1579_v55, 5  ;;  %v1710_v9 = vrot.slane %v1580_v60, 5  ;;  %v1585_v47 = vld [vmem:[%s3251_s9 + $0x70] sm:$0xf]  ;;  %v794_v59 = vld [vmem:[%s3251_s9 + $0x78] sm:$0xf] }
  0x5e   : > { %2888 = vmatmul.mubr.msk.bf16.gmra.mxu1 %vm486_vm1, %v2679_v24  ;;  %v2680_v2 = vcombine.low %v972_v62, %v982_v63  ;;  %v1001_v7 = vrot.slane %v1000_v0, 4  ;;  %v2729_v8 = vcombine.low %v1701_v57, %v1704_v4  ;;  %v1008_v11 = vshrl.u32 %v788_v61, 16  ;;  %v795_v4 = vld [vmem:[%s3251_s9 + $0x7c] sm:$0xf] }
  0x5f   : > { %2922 = vmatmul.mubr.msk.bf16.gmra.mxu0 %vm486_vm1, %v2728_v30  ;;  %v996_v12 = vsel %vm3316_vm7, %v991_v3, %v995_v45  ;;  %v1708_v13 = vsel %vm3309_vm6, %v2713_v1, %v1707_v5  ;;  %v1709_v14 = vrot.slane %v1707_v5, 4  ;;  %v1011_v15 = vshll.u32 %v788_v61, 16 }
  0x60   : > { %2891 = vmatprep.mubr.msk.bf16.mxu1 %vm486_vm1, %v2680_v2  ;;  %v1006_v17 = vsel %vm3316_vm7, %v1001_v7, %v1005_v54  ;;  %2925 = vmatprep.mubr.msk.bf16.mxu0 %vm486_vm1, %v2729_v8  ;;  %v1010_v18 = vrot.slane %v1008_v11, 4  ;;  %v1017_v19 = vshll.u32 %v789_v6, 16  ;;  %v1021_v20 = vshrl.u32 %v789_v6, 16  ;;  %v1586_v54 = vld [vmem:[%s3251_s9 + $0x74] sm:$0x1] }
  0x61   : > { %v2681_v22 = vcombine.low %v996_v12, %v1006_v17  ;;  %v1711_v23 = vsel %vm3309_vm6, %v1709_v14, %v1710_v9  ;;  %v1013_v24 = vrot.slane %v1011_v15, 5  ;;  %v1027_v25 = vshll.u32 %v790_v10, 16  ;;  %v796_v7 = vld [vmem:[%s3251_s9 + $0x80] sm:$0x1]  ;;  %v797_v14 = vld [vmem:[%s3251_s9 + $0x84] sm:$0xf] }
  0x62   : > { %v2730_v28 = vcombine.low %v1708_v13, %v1711_v23  ;;  %v1019_v29 = vrot.slane %v1017_v19, 5  ;;  %v1023_v30 = vrot.slane %v1021_v20, 4  ;;  %v1032_v31 = vshrl.u32 %v791_v16, 16  ;;  %v798_v19 = vld [vmem:[%s3251_s9 + $0x88] sm:$0xf] }
  0x63   : > { %v1014_v33 = vor.u32 %v1013_v24, %v1010_v18  ;;  %v1029_v34 = vrot.slane %v1027_v25, 5  ;;  %v1035_v35 = vshll.u32 %v791_v16, 16  ;;  %v1041_v36 = vshll.u32 %v792_v21, 16  ;;  %v799_v24 = vld [vmem:[%s3251_s9 + $0x8c] sm:$0x1] }
  0x64   : > { %v1024_v38 = vor.u32 %v1023_v30, %v1019_v29  ;;  %v1034_v39 = vrot.slane %v1032_v31, 4  ;;  %v1045_v40 = vshrl.u32 %v792_v21, 16  ;;  %v1051_v41 = vshll.u32 %v793_v26, 16  ;;  %v1587_v25 = vld [vmem:[%s3251_s9 + $0x78] sm:$0xe] }
  0x65   : > { %v1015_v43 = vrot.slane %v1014_v33, 4  ;;  %v1037_v44 = vrot.slane %v1035_v35, 5  ;;  %v1043_v45 = vrot.slane %v1041_v36, 5  ;;  %v2714_v46 = vrot.slane %v1581_v27, 9  ;;  %v1588_v30 = vld [vmem:[%s3251_s9 + $0x7c] sm:$0xf] }
  0x66   : > { %2892 = vmatmul.mubr.msk.bf16.gmra.mxu1 %vm486_vm1, %v2681_v22  ;;  %v1025_v48 = vrot.slane %v1024_v38, 4  ;;  %v1047_v50 = vrot.slane %v1045_v40, 4  ;;  %v1053_v52 = vrot.slane %v1051_v41, 5  ;;  %v1714_v53 = vrot.slane %v1582_v32, 5  ;;  %v1589_v31 = vld [vmem:[%s3251_s9 + $0x80] sm:$0x1] }
  0x67   : > { %2926 = vmatmul.mubr.msk.bf16.gmra.mxu0 %vm486_vm1, %v2730_v28  ;;  %v1020_v55 = vsel %vm3316_vm7, %v1015_v43, %v1019_v29  ;;  %v1038_v56 = vor.u32 %v1037_v44, %v1034_v39  ;;  %v1717_v57 = vrot.slane %v1583_v37, 5  ;;  %v2715_v58 = vrot.slane %v1584_v42, 9  ;;  %v1590_v36 = vld [vmem:[%s3251_s9 + $0x84] sm:$0xe]  ;;  %v1591_v41 = vld [vmem:[%s3251_s9 + $0x88] sm:$0xf] }
  0x68   : > { %v1030_v60 = vsel %vm3316_vm7, %v1025_v48, %v1029_v34  ;;  %v1048_v61 = vor.u32 %v1047_v50, %v1043_v45  ;;  %v1715_v62 = vsel %vm3309_vm6, %v2714_v46, %v1714_v53  ;;  %v1716_v63 = vrot.slane %v1714_v53, 4  ;;  %v1592_v46 = vld [vmem:[%s3251_s9 + $0x8c] sm:$0x1]  ;;  %v800_v53 = vld [vmem:[%s3251_s9 + $0x90] sm:$0xf] }
  0x69   : > { %v2682_v0 = vcombine.low %v1020_v55, %v1030_v60  ;;  %v1039_v1 = vrot.slane %v1038_v56, 4  ;;  %v1721_v2 = vrot.slane %v1585_v47, 5  ;;  %v1724_v3 = vrot.slane %v1586_v54, 5 }
  0x6a   : > { %v1049_v5 = vrot.slane %v1048_v61, 4  ;;  %v1718_v6 = vsel %vm3309_vm6, %v1716_v63, %v1717_v57  ;;  %v1056_v8 = vshrl.u32 %v794_v59, 16  ;;  %v1059_v9 = vshll.u32 %v794_v59, 16 }
  0x6b   : > { %2895 = vmatprep.mubr.msk.bf16.mxu1 %vm486_vm1, %v2682_v0  ;;  %v1044_v10 = vsel %vm3316_vm7, %v1039_v1, %v1043_v45  ;;  %v2731_v11 = vcombine.low %v1715_v62, %v1718_v6  ;;  %v1722_v12 = vsel %vm3309_vm6, %v2715_v58, %v1721_v2  ;;  %v1723_v13 = vrot.slane %v1721_v2, 4  ;;  %v801_v1 = vld [vmem:[%s3251_s9 + $0x94] sm:$0xf] }
  0x6c   : > { %v1054_v15 = vsel %vm3316_vm7, %v1049_v5, %v1053_v52  ;;  %v1058_v16 = vrot.slane %v1056_v8, 4  ;;  %v1061_v17 = vrot.slane %v1059_v9, 5  ;;  %v1065_v18 = vshll.u32 %v795_v4, 16  ;;  %v803_v8 = vld [vmem:[%s3251_s9 + $0x9c] sm:$0xf] }
  0x6d   : > { %v2683_v20 = vcombine.low %v1044_v10, %v1054_v15  ;;  %2929 = vmatprep.mubr.msk.bf16.mxu0 %vm486_vm1, %v2731_v11  ;;  %v1725_v21 = vsel %vm3309_vm6, %v1723_v13, %v1724_v3  ;;  %v1069_v22 = vshrl.u32 %v795_v4, 16  ;;  %v1075_v23 = vshll.u32 %v796_v7, 16  ;;  %v802_v7 = vld [vmem:[%s3251_s9 + $0x98] sm:$0x1] }
  0x6e   : > { %v2732_v26 = vcombine.low %v1722_v12, %v1725_v21  ;;  %v1062_v27 = vor.u32 %v1061_v17, %v1058_v16  ;;  %v1067_v28 = vrot.slane %v1065_v18, 5  ;;  %v1080_v29 = vshrl.u32 %v797_v14, 16  ;;  %v804_v17 = vld [vmem:[%s3251_s9 + $0xa0] sm:$0xf]  ;;  %v805_v21 = vld [vmem:[%s3251_s9 + $0xa4] sm:$0x1] }
  0x6f   : > { %2896 = vmatmul.mubr.msk.bf16.gmra.mxu1 %vm486_vm1, %v2683_v20  ;;  %v1071_v32 = vrot.slane %v1069_v22, 4  ;;  %v1077_v33 = vrot.slane %v1075_v23, 5  ;;  %v1083_v34 = vshll.u32 %v797_v14, 16  ;;  %v1089_v35 = vshll.u32 %v798_v19, 16  ;;  %v1593_v23 = vld [vmem:[%s3251_s9 + $0x90] sm:$0xe] }
  0x70   : > { %2930 = vmatmul.mubr.msk.bf16.gmra.mxu0 %vm486_vm1, %v2732_v26  ;;  %v1063_v37 = vrot.slane %v1062_v27, 4  ;;  %v1082_v38 = vrot.slane %v1080_v29, 4  ;;  %v1093_v39 = vshrl.u32 %v798_v19, 16  ;;  %v1099_v40 = vshll.u32 %v799_v24, 16 }
  0x71   : > { %v1072_v42 = vor.u32 %v1071_v32, %v1067_v28  ;;  %v1085_v43 = vrot.slane %v1083_v34, 5  ;;  %v1091_v44 = vrot.slane %v1089_v35, 5  ;;  %v2716_v45 = vrot.slane %v1587_v25, 9 }
  0x72   : > { %v1068_v47 = vsel %vm3316_vm7, %v1063_v37, %v1067_v28  ;;  %v1095_v48 = vrot.slane %v1093_v39, 4  ;;  %v1101_v50 = vrot.slane %v1099_v40, 5  ;;  %v1728_v52 = vrot.slane %v1588_v30, 5  ;;  %v1594_v28 = vld [vmem:[%s3251_s9 + $0x94] sm:$0xf] }
  0x73   : > { %v1073_v54 = vrot.slane %v1072_v42, 4  ;;  %v1086_v55 = vor.u32 %v1085_v43, %v1082_v38  ;;  %v1731_v56 = vrot.slane %v1589_v31, 5  ;;  %v2717_v57 = vrot.slane %v1590_v36, 9  ;;  %v1595_v37 = vld [vmem:[%s3251_s9 + $0x98] sm:$0x1] }
  0x74   : > { %v1096_v58 = vor.u32 %v1095_v48, %v1091_v44  ;;  %v1729_v59 = vsel %vm3309_vm6, %v2716_v45, %v1728_v52  ;;  %v1730_v60 = vrot.slane %v1728_v52, 4  ;;  %v1735_v61 = vrot.slane %v1591_v41, 5  ;;  %v1596_v42 = vld [vmem:[%s3251_s9 + $0x9c] sm:$0xe] }
  0x75   : > { %v1078_v62 = vsel %vm3316_vm7, %v1073_v54, %v1077_v33  ;;  %v1087_v63 = vrot.slane %v1086_v55, 4  ;;  %v1738_v0 = vrot.slane %v1592_v46, 5  ;;  %v1104_v2 = vshrl.u32 %v800_v53, 16  ;;  %v1598_v54 = vld [vmem:[%s3251_s9 + $0xa4] sm:$0x1] }
  0x76   : > { %v2684_v3 = vcombine.low %v1068_v47, %v1078_v62  ;;  %v1097_v4 = vrot.slane %v1096_v58, 4  ;;  %v1732_v5 = vsel %vm3309_vm6, %v1730_v60, %v1731_v56  ;;  %v1736_v6 = vsel %vm3309_vm6, %v2717_v57, %v1735_v61  ;;  %v1597_v47 = vld [vmem:[%s3251_s9 + $0xa0] sm:$0xf]  ;;  %v806_v55 = vld [vmem:[%s3251_s9 + $0xa8] sm:$0xf] }
  0x77   : > { %v1092_v9 = vsel %vm3316_vm7, %v1087_v63, %v1091_v44  ;;  %v2733_v10 = vcombine.low %v1729_v59, %v1732_v5  ;;  %v1737_v11 = vrot.slane %v1735_v61, 4  ;;  %v1106_v12 = vrot.slane %v1104_v2, 4 }
  0x78   : > { %2899 = vmatprep.mubr.msk.bf16.mxu1 %vm486_vm1, %v2684_v3  ;;  %v1102_v13 = vsel %vm3316_vm7, %v1097_v4, %v1101_v50  ;;  %v1107_v14 = vshll.u32 %v800_v53, 16  ;;  %v1113_v15 = vshll.u32 %v801_v1, 16  ;;  %v1117_v16 = vshrl.u32 %v801_v1, 16  ;;  %v808_v4 = vld [vmem:[%s3251_s9 + $0xb0] sm:$0x1] }
  0x79   : > { %v2685_v18 = vcombine.low %v1092_v9, %v1102_v13  ;;  %2933 = vmatprep.mubr.msk.bf16.mxu0 %vm486_vm1, %v2733_v10  ;;  %v1739_v19 = vsel %vm3309_vm6, %v1737_v11, %v1738_v0  ;;  %v1123_v20 = vshll.u32 %v802_v7, 16  ;;  %v1128_v22 = vshrl.u32 %v803_v8, 16  ;;  %v807_v0 = vld [vmem:[%s3251_s9 + $0xac] sm:$0xf]  ;;  %v809_v10 = vld [vmem:[%s3251_s9 + $0xb4] sm:$0xf] }
  0x7a   : > { %v2734_v24 = vcombine.low %v1736_v6, %v1739_v19  ;;  %v1109_v25 = vrot.slane %v1107_v14, 5  ;;  %v1115_v26 = vrot.slane %v1113_v15, 5  ;;  %v1119_v27 = vrot.slane %v1117_v16, 4  ;;  %v810_v15 = vld [vmem:[%s3251_s9 + $0xb8] sm:$0xf] }
  0x7b   : > { %2900 = vmatmul.mubr.msk.bf16.gmra.mxu1 %vm486_vm1, %v2685_v18  ;;  %v1125_v29 = vrot.slane %v1123_v20, 5  ;;  %v1130_v30 = vrot.slane %v1128_v22, 4  ;;  %v1131_v31 = vshll.u32 %v803_v8, 16  ;;  %v1137_v32 = vshll.u32 %v804_v17, 16  ;;  %v811_v20 = vld [vmem:[%s3251_s9 + $0xbc] sm:$0x1] }
  0x7c   : > { %2934 = vmatmul.mubr.msk.bf16.gmra.mxu0 %vm486_vm1, %v2734_v24  ;;  %v1110_v33 = vor.u32 %v1109_v25, %v1106_v12  ;;  %v1120_v34 = vor.u32 %v1119_v27, %v1115_v26  ;;  %v1141_v35 = vshrl.u32 %v804_v17, 16  ;;  %v1147_v36 = vshll.u32 %v805_v21, 16  ;;  %v1599_v21 = vld [vmem:[%s3251_s9 + $0xa8] sm:$0xe] }
  0x7d   : > { %v1133_v38 = vrot.slane %v1131_v31, 5  ;;  %v1139_v39 = vrot.slane %v1137_v32, 5  ;;  %v2718_v40 = vrot.slane %v1593_v23, 9  ;;  %v1742_v41 = vrot.slane %v1594_v28, 5  ;;  %v1601_v31 = vld [vmem:[%s3251_s9 + $0xb0] sm:$0x1] }
  0x7e   : > { %v1111_v43 = vrot.slane %v1110_v33, 4  ;;  %v1121_v44 = vrot.slane %v1120_v34, 4  ;;  %v1143_v45 = vrot.slane %v1141_v35, 4  ;;  %v1149_v46 = vrot.slane %v1147_v36, 5  ;;  %v1602_v36 = vld [vmem:[%s3251_s9 + $0xb4] sm:$0xe] }
  0x7f   : > { %v1134_v48 = vor.u32 %v1133_v38, %v1130_v30  ;;  %v1743_v50 = vsel %vm3309_vm6, %v2718_v40, %v1742_v41  ;;  %v1744_v52 = vrot.slane %v1742_v41, 4  ;;  %v1745_v53 = vrot.slane %v1595_v37, 5  ;;  %v1603_v41 = vld [vmem:[%s3251_s9 + $0xb8] sm:$0xf] }
  0x80   : > { %v1116_v56 = vsel %vm3316_vm7, %v1111_v43, %v1115_v26  ;;  %v1126_v57 = vsel %vm3316_vm7, %v1121_v44, %v1125_v29  ;;  %v1144_v58 = vor.u32 %v1143_v45, %v1139_v39  ;;  %v2719_v59 = vrot.slane %v1596_v42, 9  ;;  %v1600_v26 = vld [vmem:[%s3251_s9 + $0xac] sm:$0xf] }
  0x81   : > { %v2686_v60 = vcombine.low %v1116_v56, %v1126_v57  ;;  %v1135_v61 = vrot.slane %v1134_v48, 4  ;;  %v1746_v62 = vsel %vm3309_vm6, %v1744_v52, %v1745_v53  ;;  %v1749_v63 = vrot.slane %v1597_v47, 5 }
  0x82   : > { %v1145_v1 = vrot.slane %v1144_v58, 4  ;;  %v2735_v2 = vcombine.low %v1743_v50, %v1746_v62  ;;  %v1752_v3 = vrot.slane %v1598_v54, 5  ;;  %v1152_v5 = vshrl.u32 %v806_v55, 16 }
  0x83   : > { %2903 = vmatprep.mubr.msk.bf16.mxu1 %vm486_vm1, %v2686_v60  ;;  %v1140_v6 = vsel %vm3316_vm7, %v1135_v61, %v1139_v39  ;;  %v1750_v7 = vsel %vm3309_vm6, %v2719_v59, %v1749_v63  ;;  %v1751_v8 = vrot.slane %v1749_v63, 4  ;;  %v1155_v9 = vshll.u32 %v806_v55, 16 }
  0x84   : > { %v1150_v11 = vsel %vm3316_vm7, %v1145_v1, %v1149_v46  ;;  %2937 = vmatprep.mubr.msk.bf16.mxu0 %vm486_vm1, %v2735_v2  ;;  %v1154_v12 = vrot.slane %v1152_v5, 4  ;;  %v1161_v13 = vshll.u32 %v807_v0, 16  ;;  %v1165_v14 = vshrl.u32 %v807_v0, 16  ;;  %v1604_v46 = vld [vmem:[%s3251_s9 + $0xbc] sm:$0x1] }
  0x85   : > { %v2687_v16 = vcombine.low %v1140_v6, %v1150_v11  ;;  %v1753_v17 = vsel %vm3309_vm6, %v1751_v8, %v1752_v3  ;;  %v1157_v18 = vrot.slane %v1155_v9, 5  ;;  %v1171_v19 = vshll.u32 %v808_v4, 16 }
  0x86   : > { %v2736_v22 = vcombine.low %v1750_v7, %v1753_v17  ;;  %v1163_v23 = vrot.slane %v1161_v13, 5  ;;  %v1167_v24 = vrot.slane %v1165_v14, 4  ;;  %v1176_v25 = vshrl.u32 %v809_v10, 16 }
  0x87   : > { %2904 = vmatmul.mubr.msk.bf16.gmra.mxu1 %vm486_vm1, %v2687_v16  ;;  %v1158_v27 = vor.u32 %v1157_v18, %v1154_v12  ;;  %v1173_v28 = vrot.slane %v1171_v19, 5  ;;  %v1179_v29 = vshll.u32 %v809_v10, 16  ;;  %v1185_v30 = vshll.u32 %v810_v15, 16 }
  0x88   : > { %2938 = vmatmul.mubr.msk.bf16.gmra.mxu0 %vm486_vm1, %v2736_v22  ;;  %v1168_v32 = vor.u32 %v1167_v24, %v1163_v23  ;;  %v1178_v33 = vrot.slane %v1176_v25, 4  ;;  %v1189_v34 = vshrl.u32 %v810_v15, 16  ;;  %v1195_v35 = vshll.u32 %v811_v20, 16 }
  0x89   : > { %v1159_v37 = vrot.slane %v1158_v27, 4  ;;  %v1181_v38 = vrot.slane %v1179_v29, 5  ;;  %v1187_v39 = vrot.slane %v1185_v30, 5  ;;  %v2720_v40 = vrot.slane %v1599_v21, 9 }
  0x8a   : > { %v1169_v42 = vrot.slane %v1168_v32, 4  ;;  %v1191_v43 = vrot.slane %v1189_v34, 4  ;;  %v1197_v44 = vrot.slane %v1195_v35, 5  ;;  %v1756_v45 = vrot.slane %v1600_v26, 5 }
  0x8b   : > { %v1164_v47 = vsel %vm3316_vm7, %v1159_v37, %v1163_v23  ;;  %v1182_v48 = vor.u32 %v1181_v38, %v1178_v33  ;;  %v1759_v50 = vrot.slane %v1601_v31, 5  ;;  %v2721_v52 = vrot.slane %v1602_v36, 9  ;;  %v375_v33 = vld [vmem:[#allocation2 + $0xd8] sm:$0xff]  ;;  %v373_v36 = vld [vmem:[#allocation2 + $0xb0] sm:$0xff] }
  0x8c   : > { %v1174_v53 = vsel %vm3316_vm7, %v1169_v42, %v1173_v28  ;;  %v1192_v54 = vor.u32 %v1191_v43, %v1187_v39  ;;  %v1757_v55 = vsel %vm3309_vm6, %v2720_v40, %v1756_v45  ;;  %v1758_v56 = vrot.slane %v1756_v45, 4  ;;  %v376_v40 = vld [vmem:[#allocation2 + $0x18] sm:$0xff]  ;;  %v374_v45 = vld [vmem:[#allocation2] sm:$0xff] }
  0x8d   : > { %v2688_v57 = vcombine.low %v1164_v47, %v1174_v53  ;;  %v1183_v58 = vrot.slane %v1182_v48, 4  ;;  %v1763_v59 = vrot.slane %v1603_v41, 5  ;;  %v1766_v60 = vrot.slane %v1604_v46, 5 }
  0x8e   : > { %v1193_v61 = vrot.slane %v1192_v54, 4  ;;  %v1760_v62 = vsel %vm3309_vm6, %v1758_v56, %v1759_v50 }
  0x8f   : > { %2907 = vmatprep.mubr.msk.bf16.mxu1 %vm486_vm1, %v2688_v57  ;;  %v1188_v63 = vsel %vm3316_vm7, %v1183_v58, %v1187_v39  ;;  %v2737_v0 = vcombine.low %v1757_v55, %v1760_v62  ;;  %v1764_v1 = vsel %vm3309_vm6, %v2721_v52, %v1763_v59  ;;  %v1765_v2 = vrot.slane %v1763_v59, 4  ;;  %v379_v55 = vld [vmem:[#allocation2 + $0x30] sm:$0xff] }
  0x90   : > { %v1198_v3 = vsel %vm3316_vm7, %v1193_v61, %v1197_v44 }
  0x91   : > { %v2689_v4 = vcombine.low %v1188_v63, %v1198_v3  ;;  %2941 = vmatprep.mubr.msk.bf16.mxu0 %vm486_vm1, %v2737_v0  ;;  %v1767_v5 = vsel %vm3309_vm6, %v1765_v2, %v1766_v60  ;;  %v377_v60 = vld [vmem:[#allocation2 + $0x50] sm:$0xff] }
  0x92   : > { %v2738_v6 = vcombine.low %v1764_v1, %v1767_v5  ;;  %v380_v1 = vld [vmem:[#allocation2 + $0x48] sm:$0xff] }
  0x93   : > { %2908 = vmatmul.mubr.msk.bf16.gmra.mxu1 %vm486_vm1, %v2689_v4 }
  0x94   : > { %2942 = vmatmul.mubr.msk.bf16.gmra.mxu0 %vm486_vm1, %v2738_v6 }
  0xee   : > { %v3569_v7 = vpop.f32.mrf.mxu1 }
  0xef   : > { %v2847_v8 = vpop.f32.mrf.mxu0 }
  0xf0   : > { %v3571_v9 = vpop.f32.mrf.mxu1  ;;  %v702_v38 = vadd.f32 %v2847_v8, %v375_v33  ;;  %v378_v8 = vld [vmem:[#allocation2 + $0x68] sm:$0xff] }
  0xf1   : > { %v573_v10 = vpop.f32.mrf.mxu0 }
  0xf2   : > { %v3573_v11 = vpop.f32.mrf.mxu1  ;;  %v700_v42 = vadd.f32 %v573_v10, %v373_v36 }
  0xf3   : > { %v2848_v51 = vpop.f32.mrf.mxu0 }
  0xf4   : > { %v3575_v12 = vpop.f32.mrf.mxu1  ;;  %v703_v47 = vadd.f32 %v2848_v51, %v376_v40 }
  0xf5   : > { %v576_v13 = vpop.f32.mrf.mxu0 }
  0xf6   : > { %v3577_v14 = vpop.f32.mrf.mxu1  ;;  %v701_v54 = vadd.f32 %v576_v13, %v374_v45 }
  0xf7   : > { %v2851_v49 = vpop.f32.mrf.mxu0 }
  0xf8   : > { %v3579_v15 = vpop.f32.mrf.mxu1  ;;  %v706_v0 = vadd.f32 %v2851_v49, %v379_v55  ;;  %v382_v55 = vld [vmem:[#allocation2 + $0x88] sm:$0xff] }
  0xf9   : > { %v589_v16 = vpop.f32.mrf.mxu0 }
  0xfa   : > { %v3581_v17 = vpop.f32.mrf.mxu1  ;;  %v704_v4 = vadd.f32 %v589_v16, %v377_v60  ;;  %v383_v16 = vld [vmem:[#allocation2 + $0xe8] sm:$0xff] }
  0xfb   : > { %v2852_v18 = vpop.f32.mrf.mxu0 }
  0xfc   : > { %v3583_v19 = vpop.f32.mrf.mxu1  ;;  %v707_v51 = vadd.f32 %v2852_v18, %v380_v1 }
  0xfd   : > { %v592_v20 = vpop.f32.mrf.mxu0 }
  0xfe   : > { %v3585_v21 = vpop.f32.mrf.mxu1  ;;  %v705_v40 = vadd.f32 %v592_v20, %v378_v8  ;;  %v388_v8 = vld [vmem:[#allocation2 + $0x78] sm:$0xff] }
  0xff   : > { %v3587_v22 = vpop.f32.mrf.mxu0 }
 0x100   : > { %v3589_v23 = vpop.f32.mrf.mxu1  ;;  %v710_v18 = vadd.f32 %v3587_v22, %v383_v16 }
 0x101   : > { %v3591_v24 = vpop.f32.mrf.mxu0 }
 0x102   : > { %v3593_v25 = vpop.f32.mrf.mxu1 }
 0x103   : > { %v3595_v26 = vpop.f32.mrf.mxu0 }
 0x104   : > { %v3597_v27 = vpop.f32.mrf.mxu1 }
 0x105   : > { %v3599_v28 = vpop.f32.mrf.mxu0 }
 0x106   : > { %v3601_v29 = vpop.f32.mrf.mxu1 }
 0x107   : > { %v3603_v30 = vpop.f32.mrf.mxu0 }
 0x108   : > { %v3605_v31 = vpop.f32.mrf.mxu1 }
 0x109   : > { %v3607_v32 = vpop.f32.mrf.mxu0 }
 0x10a   : > { %v3609_v34 = vpop.f32.mrf.mxu1 }
 0x10b   : > { %v3611_v35 = vpop.f32.mrf.mxu0 }
 0x10c   : > { %v3613_v37 = vpop.f32.mrf.mxu1 }
 0x10d   : > { %v3615_v39 = vpop.f32.mrf.mxu0 }
 0x10e   : > { %v2881_v41 = vpop.f32.mrf.mxu1 }
 0x10f   : > { %v1495_v43 = vadd.f32 %v2881_v41, %v702_v38  ;;  %v2915_v44 = vpop.f32.mrf.mxu0 }
 0x110   : > { %v1366_v46 = vpop.f32.mrf.mxu1 }
 0x111   : > { %v1493_v48 = vadd.f32 %v1366_v46, %v700_v42  ;;  %v2064_v50 = vadd.f32 %v2915_v44, %v1495_v43  ;;  %v1935_v52 = vpop.f32.mrf.mxu0 }
 0x112   : > { %v2882_v53 = vpop.f32.mrf.mxu1 }
 0x113   : > { %v1496_v56 = vadd.f32 %v2882_v53, %v703_v47  ;;  %2096 = vst [vmem:[#allocation2 + $0xd8] sm:$0xff] %v2064_v50  ;;  %v2062_v57 = vadd.f32 %v1935_v52, %v1493_v48  ;;  %v2916_v58 = vpop.f32.mrf.mxu0  ;;  %v381_v48 = vld [vmem:[#allocation2 + $0x80] sm:$0xff]  ;;  %v384_v50 = vld [vmem:[#allocation2 + $0xb8] sm:$0xff] }
 0x114   : > { %v1369_v59 = vpop.f32.mrf.mxu1  ;;  %v708_v20 = vadd.f32 %v3591_v24, %v381_v48 }
 0x115   : > { %v1494_v61 = vadd.f32 %v1369_v59, %v701_v54  ;;  %2094 = vst [vmem:[#allocation2 + $0xb0] sm:$0xff] %v2062_v57  ;;  %v2065_v62 = vadd.f32 %v2916_v58, %v1496_v56  ;;  %v1938_v63 = vpop.f32.mrf.mxu0  ;;  %v711_v57 = vadd.f32 %v3595_v26, %v384_v50  ;;  %v389_v50 = vld [vmem:[#allocation2 + $0x38] sm:$0xff] }
 0x116   : > { %v2885_v2 = vpop.f32.mrf.mxu1 }
 0x117   : > { %2097 = vst [vmem:[#allocation2 + $0x18] sm:$0xff] %v2065_v62  ;;  %v2063_v3 = vadd.f32 %v1938_v63, %v1494_v61  ;;  %v1499_v5 = vadd.f32 %v2885_v2, %v706_v0  ;;  %v2919_v6 = vpop.f32.mrf.mxu0  ;;  %v709_v62 = vadd.f32 %v3599_v28, %v382_v55  ;;  %v390_v55 = vld [vmem:[#allocation2 + $0x58] sm:$0xff] }
 0x118   : > { %v1382_v10 = vpop.f32.mrf.mxu1 }
 0x119   : > { %2095 = vst [vmem:[#allocation2] sm:$0xff] %v2063_v3  ;;  %v1497_v13 = vadd.f32 %v1382_v10, %v704_v4  ;;  %v2068_v33 = vadd.f32 %v2919_v6, %v1499_v5  ;;  %v1951_v36 = vpop.f32.mrf.mxu0  ;;  %v387_v3 = vld [vmem:[#allocation2 + $0x8] sm:$0xff]  ;;  %v385_v6 = vld [vmem:[#allocation2 + $0x60] sm:$0xff] }
 0x11a   : > { %v2886_v38 = vpop.f32.mrf.mxu1  ;;  %v714_v26 = vadd.f32 %v3603_v30, %v387_v3  ;;  %v712_v28 = vadd.f32 %v3607_v32, %v385_v6 }
 0x11b   : > { %v1500_v41 = vadd.f32 %v2886_v38, %v707_v51  ;;  %2100 = vst [vmem:[#allocation2 + $0x30] sm:$0xff] %v2068_v33  ;;  %v2066_v42 = vadd.f32 %v1951_v36, %v1497_v13  ;;  %v2920_v49 = vpop.f32.mrf.mxu0  ;;  %v386_v33 = vld [vmem:[#allocation2 + $0xf0] sm:$0xff]  ;;  %v715_v38 = vadd.f32 %v3611_v35, %v388_v8 }
 0x11c   : > { %v1385_v43 = vpop.f32.mrf.mxu1 }
 0x11d   : > { %v1498_v44 = vadd.f32 %v1385_v43, %v705_v40  ;;  %2098 = vst [vmem:[#allocation2 + $0x50] sm:$0xff] %v2066_v42  ;;  %v2069_v45 = vadd.f32 %v2920_v49, %v1500_v41  ;;  %v1954_v46 = vpop.f32.mrf.mxu0  ;;  %v713_v43 = vadd.f32 %v3615_v39, %v386_v33  ;;  %v716_v39 = vadd.f32 %v3571_v9, %v389_v50 }
 0x11e   : > { %v2889_v52 = vpop.f32.mrf.mxu1 }
 0x11f   : > { %2101 = vst [vmem:[#allocation2 + $0x48] sm:$0xff] %v2069_v45  ;;  %v2067_v47 = vadd.f32 %v1954_v46, %v1498_v44  ;;  %v1503_v53 = vadd.f32 %v2889_v52, %v710_v18  ;;  %v2923_v54 = vpop.f32.mrf.mxu0  ;;  %v392_v52 = vld [vmem:[#allocation2 + $0xc8] sm:$0xff] }
 0x120   : > { %v1398_v56 = vpop.f32.mrf.mxu1 }
 0x121   : > { %2099 = vst [vmem:[#allocation2 + $0x68] sm:$0xff] %v2067_v47  ;;  %v1501_v58 = vadd.f32 %v1398_v56, %v708_v20  ;;  %v2072_v59 = vadd.f32 %v2923_v54, %v1503_v53  ;;  %v1967_v60 = vpop.f32.mrf.mxu0  ;;  %v391_v47 = vld [vmem:[#allocation2 + $0x40] sm:$0xff] }
 0x122   : > { %v2890_v61 = vpop.f32.mrf.mxu1  ;;  %v718_v35 = vadd.f32 %v3569_v7, %v391_v47 }
 0x123   : > { %v1504_v63 = vadd.f32 %v2890_v61, %v711_v57  ;;  %2104 = vst [vmem:[#allocation2 + $0xe8] sm:$0xff] %v2072_v59  ;;  %v2070_v22 = vadd.f32 %v1967_v60, %v1501_v58  ;;  %v2924_v0 = vpop.f32.mrf.mxu0  ;;  %v719_v57 = vadd.f32 %v3573_v11, %v392_v52 }
 0x124   : > { %v1401_v1 = vpop.f32.mrf.mxu1 }
 0x125   : > { %v1502_v2 = vadd.f32 %v1401_v1, %v709_v62  ;;  %2102 = vst [vmem:[#allocation2 + $0x80] sm:$0xff] %v2070_v22  ;;  %v2073_v24 = vadd.f32 %v2924_v0, %v1504_v63  ;;  %v1970_v4 = vpop.f32.mrf.mxu0  ;;  %v717_v62 = vadd.f32 %v3575_v12, %v390_v55 }
 0x126   : > { %v2893_v10 = vpop.f32.mrf.mxu1 }
 0x127   : > { %2105 = vst [vmem:[#allocation2 + $0xb8] sm:$0xff] %v2073_v24  ;;  %v2071_v5 = vadd.f32 %v1970_v4, %v1502_v2  ;;  %v1507_v51 = vadd.f32 %v2893_v10, %v714_v26  ;;  %v2927_v13 = vpop.f32.mrf.mxu0  ;;  %v395_v2 = vld [vmem:[#allocation2 + $0x70] sm:$0xff]  ;;  %v393_v4 = vld [vmem:[#allocation2 + $0xe0] sm:$0xff] }
 0x128   : > { %v1414_v36 = vpop.f32.mrf.mxu1  ;;  %v722_v11 = vadd.f32 %v3577_v14, %v395_v2  ;;  %v720_v12 = vadd.f32 %v3579_v15, %v393_v4  ;;  %v394_v10 = vld [vmem:[#allocation2 + $0x90] sm:$0xff] }
 0x129   : > { %2103 = vst [vmem:[#allocation2 + $0x88] sm:$0xff] %v2071_v5  ;;  %v1505_v40 = vadd.f32 %v1414_v36, %v712_v28  ;;  %v2076_v41 = vadd.f32 %v2927_v13, %v1507_v51  ;;  %v1983_v42 = vpop.f32.mrf.mxu0  ;;  %v396_v5 = vld [vmem:[#allocation2 + $0xc0] sm:$0xff] }
 0x12a   : > { %v2894_v49 = vpop.f32.mrf.mxu1  ;;  %v723_v51 = vadd.f32 %v3581_v17, %v396_v5 }
 0x12b   : > { %v1508_v44 = vadd.f32 %v2894_v49, %v715_v38  ;;  %2108 = vst [vmem:[#allocation2 + $0x8] sm:$0xff] %v2076_v41  ;;  %v2074_v30 = vadd.f32 %v1983_v42, %v1505_v40  ;;  %v2928_v45 = vpop.f32.mrf.mxu0  ;;  %v721_v40 = vadd.f32 %v3583_v19, %v394_v10 }
 0x12c   : > { %v1417_v16 = vpop.f32.mrf.mxu1 }
 0x12d   : > { %v1506_v46 = vadd.f32 %v1417_v16, %v713_v43  ;;  %2106 = vst [vmem:[#allocation2 + $0x60] sm:$0xff] %v2074_v30  ;;  %v2077_v32 = vadd.f32 %v2928_v45, %v1508_v44  ;;  %v1986_v48 = vpop.f32.mrf.mxu0  ;;  %v399_v44 = vld [vmem:[#allocation2 + $0x10] sm:$0xff]  ;;  %v397_v16 = vld [vmem:[#allocation2 + $0xa8] sm:$0xff] }
 0x12e   : > { %v726_v17 = vadd.f32 %v3585_v21, %v399_v44  ;;  %v724_v19 = vadd.f32 %v3589_v23, %v397_v16 }
 0x12f   : > { %2109 = vst [vmem:[#allocation2 + $0x78] sm:$0xff] %v2077_v32  ;;  %v2075_v18 = vadd.f32 %v1986_v48, %v1506_v46  ;;  %v2897_v20 = vpop.f32.mrf.mxu1  ;;  %v400_v46 = vld [vmem:[#allocation2 + $0x28] sm:$0xff] }
 0x130   : > { %v1511_v53 = vadd.f32 %v2897_v20, %v718_v35  ;;  %v2931_v54 = vpop.f32.mrf.mxu0  ;;  %v727_v35 = vadd.f32 %v3593_v25, %v400_v46 }
 0x131   : > { %2107 = vst [vmem:[#allocation2 + $0xf0] sm:$0xff] %v2075_v18  ;;  %v1430_v56 = vpop.f32.mrf.mxu1  ;;  %v398_v18 = vld [vmem:[#allocation2 + $0xd0] sm:$0xff] }
 0x132   : > { %v1509_v58 = vadd.f32 %v1430_v56, %v716_v39  ;;  %v2080_v59 = vadd.f32 %v2931_v54, %v1511_v53  ;;  %v1999_v60 = vpop.f32.mrf.mxu0  ;;  %v725_v54 = vadd.f32 %v3597_v27, %v398_v18 }
 0x133   : > { %v2898_v61 = vpop.f32.mrf.mxu1 }
 0x134   : > { %v1512_v63 = vadd.f32 %v2898_v61, %v719_v57  ;;  %2112 = vst [vmem:[#allocation2 + $0x40] sm:$0xff] %v2080_v59  ;;  %v2078_v7 = vadd.f32 %v1999_v60, %v1509_v58  ;;  %v2932_v22 = vpop.f32.mrf.mxu0  ;;  %v403_v59 = vld [vmem:[#allocation2 + $0x20] sm:$0xff] }
 0x135   : > { %v1433_v0 = vpop.f32.mrf.mxu1  ;;  %v730_v25 = vadd.f32 %v3601_v29, %v403_v59 }
 0x136   : > { %v1510_v1 = vadd.f32 %v1433_v0, %v717_v62  ;;  %2110 = vst [vmem:[#allocation2 + $0x38] sm:$0xff] %v2078_v7  ;;  %v2081_v9 = vadd.f32 %v2932_v22, %v1512_v63  ;;  %v2002_v24 = vpop.f32.mrf.mxu0  ;;  %v401_v62 = vld [vmem:[#allocation2 + $0xa0] sm:$0xff]  ;;  %v404_v63 = vld [vmem:[#allocation2 + $0x98] sm:$0xff] }
 0x137   : > { %v728_v27 = vadd.f32 %v3605_v31, %v401_v62  ;;  %v731_v2 = vadd.f32 %v3609_v34, %v404_v63 }
 0x138   : > { %2113 = vst [vmem:[#allocation2 + $0xc8] sm:$0xff] %v2081_v9  ;;  %v2079_v3 = vadd.f32 %v2002_v24, %v1510_v1  ;;  %v402_v1 = vld [vmem:[#allocation2 + $0xf8] sm:$0xff] }
 0x139   : > { %v729_v5 = vadd.f32 %v3613_v37, %v402_v1 }
 0x13a   : > { %2111 = vst [vmem:[#allocation2 + $0x58] sm:$0xff] %v2079_v3 }
 0x13b   : > { %v2901_v6 = vpop.f32.mrf.mxu1 }
 0x13c   : > { %v1515_v26 = vadd.f32 %v2901_v6, %v722_v11  ;;  %v2935_v8 = vpop.f32.mrf.mxu0 }
 0x13d   : > { %v1446_v28 = vpop.f32.mrf.mxu1 }
 0x13e   : > { %v1513_v13 = vadd.f32 %v1446_v28, %v720_v12  ;;  %v2084_v33 = vadd.f32 %v2935_v8, %v1515_v26  ;;  %v2015_v36 = vpop.f32.mrf.mxu0 }
 0x13f   : > { %v2902_v38 = vpop.f32.mrf.mxu1 }
 0x140   : > { %v1516_v41 = vadd.f32 %v2902_v38, %v723_v51  ;;  %2116 = vst [vmem:[#allocation2 + $0x70] sm:$0xff] %v2084_v33  ;;  %v2082_v14 = vadd.f32 %v2015_v36, %v1513_v13  ;;  %v2936_v42 = vpop.f32.mrf.mxu0 }
 0x141   : > { %v1449_v49 = vpop.f32.mrf.mxu1 }
 0x142   : > { %v1514_v43 = vadd.f32 %v1449_v49, %v721_v40  ;;  %2114 = vst [vmem:[#allocation2 + $0xe0] sm:$0xff] %v2082_v14  ;;  %v2085_v15 = vadd.f32 %v2936_v42, %v1516_v41  ;;  %v2018_v30 = vpop.f32.mrf.mxu0 }
 0x144   : > { %2117 = vst [vmem:[#allocation2 + $0xc0] sm:$0xff] %v2085_v15  ;;  %v2083_v45 = vadd.f32 %v2018_v30, %v1514_v43 }
 0x146   : > { %2115 = vst [vmem:[#allocation2 + $0x90] sm:$0xff] %v2083_v45 }
 0x147   : > { %v2905_v32 = vpop.f32.mrf.mxu1 }
 0x148   : > { %v1519_v47 = vadd.f32 %v2905_v32, %v726_v17  ;;  %v2939_v48 = vpop.f32.mrf.mxu0 }
 0x149   : > { %v1462_v50 = vpop.f32.mrf.mxu1 }
 0x14a   : > { %v1517_v52 = vadd.f32 %v1462_v50, %v724_v19  ;;  %v2088_v20 = vadd.f32 %v2939_v48, %v1519_v47  ;;  %v2031_v39 = vpop.f32.mrf.mxu0 }
 0x14b   : > { %v2906_v53 = vpop.f32.mrf.mxu1 }
 0x14c   : > { %v1520_v55 = vadd.f32 %v2906_v53, %v727_v35  ;;  %2120 = vst [vmem:[#allocation2 + $0x10] sm:$0xff] %v2088_v20  ;;  %v2086_v21 = vadd.f32 %v2031_v39, %v1517_v52  ;;  %v2940_v56 = vpop.f32.mrf.mxu0 }
 0x14d   : > { %v1465_v57 = vpop.f32.mrf.mxu1 }
 0x14e   : > { %v1518_v58 = vadd.f32 %v1465_v57, %v725_v54  ;;  %2118 = vst [vmem:[#allocation2 + $0xa8] sm:$0xff] %v2086_v21  ;;  %v2089_v23 = vadd.f32 %v2940_v56, %v1520_v55  ;;  %v2034_v60 = vpop.f32.mrf.mxu0 }
 0x150   : > { %2121 = vst [vmem:[#allocation2 + $0x28] sm:$0xff] %v2089_v23  ;;  %v2087_v61 = vadd.f32 %v2034_v60, %v1518_v58 }
 0x152   : > { %2119 = vst [vmem:[#allocation2 + $0xd0] sm:$0xff] %v2087_v61 }
 0x153   : > { %v2909_v7 = vpop.f32.mrf.mxu1 }
 0x154   : > { %v1523_v22 = vadd.f32 %v2909_v7, %v730_v25  ;;  %v2943_v0 = vpop.f32.mrf.mxu0 }
 0x155   : > { %v1478_v9 = vpop.f32.mrf.mxu1 }
 0x156   : > { %v1521_v24 = vadd.f32 %v1478_v9, %v728_v27  ;;  %v2092_v3 = vadd.f32 %v2943_v0, %v1523_v22  ;;  %v2047_v4 = vpop.f32.mrf.mxu0 }
 0x157   : > { %v2910_v11 = vpop.f32.mrf.mxu1 }
 0x158   : > { %v1524_v6 = vadd.f32 %v2910_v11, %v731_v2  ;;  %2124 = vst [vmem:[#allocation2 + $0x20] sm:$0xff] %v2092_v3  ;;  %v2090_v29 = vadd.f32 %v2047_v4, %v1521_v24  ;;  %v2944_v12 = vpop.f32.mrf.mxu0 }
 0x159   : > { %v1481_v26 = vpop.f32.mrf.mxu1 }
 0x15a   : > { %v1522_v8 = vadd.f32 %v1481_v26, %v729_v5  ;;  %2122 = vst [vmem:[#allocation2 + $0xa0] sm:$0xff] %v2090_v29  ;;  %v2093_v31 = vadd.f32 %v2944_v12, %v1524_v6  ;;  %v2050_v10 = vpop.f32.mrf.mxu0  ;;  %2129 = sbr.rel (%p2755_p9) target bundleno = 439 (0x1b7), region = 44 }
 0x15c   : > { %2125 = vst [vmem:[#allocation2 + $0x98] sm:$0xff] %v2093_v31  ;;  %v2091_v28 = vadd.f32 %v2050_v10, %v1522_v8 }
 0x15e   : > { %2123 = vst [vmem:[#allocation2 + $0xf8] sm:$0xff] %v2091_v28 }
 0x15f   : > { %v2130_v34 = vld [vmem:[#allocation2 + $0xb0] sm:$0xff]  ;;  %v3645_v37 = vld [vmem:[%s3893_s2] ss:$0 sm:$0xff]  ;;  %v2132_v36 = vld [vmem:[#allocation2 + $0xd8] sm:$0xff] }
 0x160   : > { %v3650_v51 = vld [vmem:[%s3894_s3] ss:$0 sm:$0xff]  ;;  %v2169_v13 = vmul.f32 %v3645_v37, %v2130_v34  ;;  %v2133_v38 = vld [vmem:[#allocation2 + $0x18] sm:$0xff]  ;;  %v2171_v41 = vmul.f32 %v3645_v37, %v2132_v36  ;;  %v2134_v42 = vld [vmem:[#allocation2 + $0x50] sm:$0xff] }
 0x161   : > { %v2131_v33 = vld [vmem:[#allocation2] sm:$0xff]  ;;  %v2172_v14 = vmul.f32 %v3645_v37, %v2133_v38  ;;  %v2135_v49 = vld [vmem:[#allocation2 + $0x68] sm:$0xff]  ;;  %v2136_v43 = vld [vmem:[#allocation2 + $0x30] sm:$0xff]  ;;  %v2173_v44 = vmul.f32 %v3645_v37, %v2134_v42 }
 0x162   : > { %v2170_v40 = vmul.f32 %v3645_v37, %v2131_v33  ;;  %v3657_v15 = vadd.f32 %v3650_v51, %v2169_v13  ;;  %v2174_v30 = vmul.f32 %v3645_v37, %v2135_v49  ;;  %v2175_v45 = vmul.f32 %v3645_v37, %v2136_v43  ;;  %v2137_v16 = vld [vmem:[#allocation2 + $0x48] sm:$0xff]  ;;  %v2138_v47 = vld [vmem:[#allocation2 + $0x80] sm:$0xff]  ;;  %v2141_v39 = vld [vmem:[#allocation2 + $0xb8] sm:$0xff] }
 0x163   : > { %v3666_v46 = vadd.f32 %v3650_v51, %v2171_v41  ;;  %v3669_v32 = vadd.f32 %v3650_v51, %v2172_v14  ;;  %v2176_v19 = vmul.f32 %v3645_v37, %v2137_v16  ;;  %v2139_v48 = vld [vmem:[#allocation2 + $0x88] sm:$0xff]  ;;  %v3674_v35 = vadd.f32 %v3650_v51, %v2173_v44  ;;  %v2142_v53 = vld [vmem:[#allocation2 + $0x60] sm:$0xff]  ;;  %v2143_v54 = vld [vmem:[#allocation2 + $0xf0] sm:$0xff] }
 0x164   : > { %v3663_v17 = vadd.f32 %v3650_v51, %v2170_v40  ;;  %v2140_v18 = vld [vmem:[#allocation2 + $0xe8] sm:$0xff]  ;;  %v2758_v50 = vmul.f32 -1.442695, %v3657_v15  ;;  %v3677_v52 = vadd.f32 %v3650_v51, %v2174_v30  ;;  %v3680_v20 = vadd.f32 %v3650_v51, %v2175_v45  ;;  %v2145_v3 = vld [vmem:[#allocation2 + $0x78] sm:$0xff]  ;;  %v2148_v49 = vld [vmem:[#allocation2 + $0x40] sm:$0xff] }
 0x165   : > { %v2760_v21 = vmul.f32 -1.442695, %v3666_v46  ;;  %v2761_v56 = vmul.f32 -1.442695, %v3669_v32  ;;  %v3686_v57 = vadd.f32 %v3650_v51, %v2176_v19  ;;  %v2762_v58 = vmul.f32 -1.442695, %v3674_v35 }
 0x166   : > { %v2759_v55 = vmul.f32 -1.442695, %v3663_v17  ;;  %3011 = vpow2.f32 %v2758_v50  ;;  %v2763_v23 = vmul.f32 -1.442695, %v3677_v52  ;;  %v2764_v59 = vmul.f32 -1.442695, %v3680_v20 }
 0x167   : > { %v2765_v60 = vmul.f32 -1.442695, %v3686_v57  ;;  %v2177_v61 = vmul.f32 %v3645_v37, %v2138_v47  ;;  %v2178_v62 = vmul.f32 %v3645_v37, %v2139_v48  ;;  %v2179_v25 = vmul.f32 %v3645_v37, %v2140_v18  ;;  %v2144_v24 = vld [vmem:[#allocation2 + $0x8] sm:$0xff]  ;;  %v2146_v36 = vld [vmem:[#allocation2 + $0x38] sm:$0xff]  ;;  %v2150_v48 = vld [vmem:[#allocation2 + $0xe0] sm:$0xff] }
 0x168   : > { %3013 = vpow2.f32 %v2759_v55  ;;  %v2180_v63 = vmul.f32 %v3645_v37, %v2141_v39  ;;  %v2181_v7 = vmul.f32 %v3645_v37, %v2142_v53  ;;  %v2182_v0 = vmul.f32 %v3645_v37, %v2143_v54  ;;  %v2147_v41 = vld [vmem:[#allocation2 + $0x58] sm:$0xff]  ;;  %v2149_v45 = vld [vmem:[#allocation2 + $0xc8] sm:$0xff]  ;;  %v2151_v53 = vld [vmem:[#allocation2 + $0x90] sm:$0xff] }
 0x169   : > { %3015 = vpow2.f32 %v2760_v21  ;;  %v3698_v27 = vadd.f32 %v3650_v51, %v2177_v61  ;;  %v3701_v22 = vadd.f32 %v3650_v51, %v2178_v62  ;;  %v3705_v1 = vadd.f32 %v3650_v51, %v2179_v25  ;;  %v2153_v61 = vld [vmem:[#allocation2 + $0xc0] sm:$0xff] }
 0x16a   : > { %3017 = vpow2.f32 %v2761_v56  ;;  %v3708_v9 = vadd.f32 %v3650_v51, %v2180_v63  ;;  %v3711_v2 = vadd.f32 %v3650_v51, %v2181_v7  ;;  %v3716_v5 = vadd.f32 %v3650_v51, %v2182_v0  ;;  %v2152_v56 = vld [vmem:[#allocation2 + $0x70] sm:$0xff] }
 0x16b   : > { %3019 = vpow2.f32 %v2762_v58  ;;  %v2766_v4 = vmul.f32 -1.442695, %v3698_v27  ;;  %v2767_v11 = vmul.f32 -1.442695, %v3701_v22  ;;  %v2768_v6 = vmul.f32 -1.442695, %v3705_v1 }
 0x16c   : > { %3021 = vpow2.f32 %v2763_v23  ;;  %v2769_v29 = vmul.f32 -1.442695, %v3708_v9  ;;  %v2183_v12 = vmul.f32 %v3645_v37, %v2144_v24  ;;  %v2184_v26 = vmul.f32 %v3645_v37, %v2145_v3 }
 0x16d   : > { %3023 = vpow2.f32 %v2764_v59  ;;  %v2770_v8 = vmul.f32 -1.442695, %v3711_v2  ;;  %v2771_v31 = vmul.f32 -1.442695, %v3716_v5  ;;  %v2185_v30 = vmul.f32 %v3645_v37, %v2146_v36 }
 0x16e   : > { %3025 = vpow2.f32 %v2765_v60  ;;  %v3725_v10 = vadd.f32 %v3650_v51, %v2183_v12  ;;  %v3728_v28 = vadd.f32 %v3650_v51, %v2184_v26  ;;  %v2186_v47 = vmul.f32 %v3645_v37, %v2147_v41 }
 0x16f   : > { %3027 = vpow2.f32 %v2766_v4  ;;  %v2187_v39 = vmul.f32 %v3645_v37, %v2148_v49  ;;  %v2188_v21 = vmul.f32 %v3645_v37, %v2149_v45  ;;  %v3737_v59 = vadd.f32 %v3650_v51, %v2185_v30 }
 0x170   : > { %3029 = vpow2.f32 %v2767_v11  ;;  %v2772_v34 = vmul.f32 -1.442695, %v3725_v10  ;;  %v2773_v13 = vmul.f32 -1.442695, %v3728_v28  ;;  %v2189_v60 = vmul.f32 %v3645_v37, %v2150_v48 }
 0x171   : > { %3031 = vpow2.f32 %v2768_v6  ;;  %v3741_v63 = vadd.f32 %v3650_v51, %v2186_v47  ;;  %v2190_v7 = vmul.f32 %v3645_v37, %v2151_v53  ;;  %v3745_v3 = vadd.f32 %v3650_v51, %v2187_v39  ;;  %v2157_v39 = vld [vmem:[#allocation2 + $0x28] sm:$0xff] }
 0x172   : > { %3033 = vpow2.f32 %v2769_v29  ;;  %v2191_v4 = vmul.f32 %v3645_v37, %v2152_v56  ;;  %v3749_v29 = vadd.f32 %v3650_v51, %v2188_v21  ;;  %v2192_v12 = vmul.f32 %v3645_v37, %v2153_v61  ;;  %v2158_v56 = vld [vmem:[#allocation2 + $0xa0] sm:$0xff] }
 0x173   : > { %3035 = vpow2.f32 %v2770_v8  ;;  %v3012_v33 = vpop.eup %3011  ;;  %v2775_v36 = vmul.f32 -1.442695, %v3741_v63 }
 0x174   : > { %3037 = vpow2.f32 %v2771_v31  ;;  %v2336_v40 = vadd.f32 1.0, %v3012_v33  ;;  %v2774_v31 = vmul.f32 -1.442695, %v3737_v59  ;;  %v3762_v49 = vadd.f32 %v3650_v51, %v2191_v4  ;;  %v2160_v4 = vld [vmem:[#allocation2 + $0x20] sm:$0xff] }
 0x175   : > { %v3014_v38 = vpop.eup %3013  ;;  %3039 = vpow2.f32 %v2772_v34  ;;  %v3754_v34 = vadd.f32 %v3650_v51, %v2189_v60  ;;  %v2777_v45 = vmul.f32 -1.442695, %v3749_v29 }
 0x176   : > { %v3016_v14 = vpop.eup %3015  ;;  %v2337_v42 = vadd.f32 1.0, %v3014_v38  ;;  %3041 = vpow2.f32 %v2773_v13  ;;  %v3758_v38 = vadd.f32 %v3650_v51, %v2190_v7  ;;  %v2780_v60 = vmul.f32 -1.442695, %v3762_v49 }
 0x177   : > { %v3018_v43 = vpop.eup %3017  ;;  %3043 = vrcp.f32 %v2336_v40  ;;  %v2338_v44 = vadd.f32 1.0, %v3016_v14  ;;  %v2154_v40 = vld [vmem:[#allocation2 + $0xa8] sm:$0xff] }
 0x178   : > { %v3020_v16 = vpop.eup %3019  ;;  %3045 = vrcp.f32 %v2337_v42  ;;  %v2339_v19 = vadd.f32 1.0, %v3018_v43  ;;  %v2776_v42 = vmul.f32 -1.442695, %v3745_v3  ;;  %v2155_v43 = vld [vmem:[#allocation2 + $0xd0] sm:$0xff] }
 0x179   : > { %v3022_v18 = vpop.eup %3021  ;;  %3047 = vrcp.f32 %v2338_v44  ;;  %v2340_v50 = vadd.f32 1.0, %v3020_v16  ;;  %v3766_v16 = vadd.f32 %v3650_v51, %v2192_v12  ;;  %v2194_v21 = vmul.f32 %v3645_v37, %v2155_v43 }
 0x17a   : > { %v3024_v54 = vpop.eup %3023  ;;  %3049 = vrcp.f32 %v2339_v19  ;;  %v2341_v55 = vadd.f32 1.0, %v3022_v18  ;;  %v2156_v19 = vld [vmem:[#allocation2 + $0x10] sm:$0xff]  ;;  %v2778_v18 = vmul.f32 -1.442695, %v3754_v34  ;;  %v2197_v12 = vmul.f32 %v3645_v37, %v2158_v56 }
 0x17b   : > { %v3026_v58 = vpop.eup %3025  ;;  %3051 = vrcp.f32 %v2340_v50  ;;  %v2342_v23 = vadd.f32 1.0, %v3024_v54  ;;  %v2193_v50 = vmul.f32 %v3645_v37, %v2154_v40  ;;  %v2195_v61 = vmul.f32 %v3645_v37, %v2156_v19 }
 0x17c   : > { %v3028_v62 = vpop.eup %3027  ;;  %3053 = vrcp.f32 %v2341_v55  ;;  %v2343_v25 = vadd.f32 1.0, %v3026_v58  ;;  %v2779_v55 = vmul.f32 -1.442695, %v3758_v38 }
 0x17d   : > { %v3030_v0 = vpop.eup %3029  ;;  %3055 = vrcp.f32 %v2342_v23  ;;  %v2344_v24 = vadd.f32 1.0, %v3028_v62  ;;  %v2159_v62 = vld [vmem:[#allocation2 + $0xf8] sm:$0xff]  ;;  %v3793_v40 = vadd.f32 %v3650_v51, %v2195_v61 }
 0x17e   : > { %v3032_v11 = vpop.eup %3031  ;;  %3057 = vrcp.f32 %v2343_v25  ;;  %v2345_v6 = vadd.f32 1.0, %v3030_v0  ;;  %v2781_v0 = vmul.f32 -1.442695, %v3766_v16 }
 0x17f   : > { %v3034_v26 = vpop.eup %3033  ;;  %3059 = vrcp.f32 %v2344_v24  ;;  %v2346_v8 = vadd.f32 1.0, %v3032_v11  ;;  %v2196_v24 = vmul.f32 %v3645_v37, %v2157_v39 }
 0x180   : > { %v3036_v13 = vpop.eup %3035  ;;  %3061 = vrcp.f32 %v2345_v6  ;;  %v2347_v33 = vadd.f32 1.0, %v3034_v26  ;;  %v3781_v6 = vadd.f32 %v3650_v51, %v2193_v50  ;;  %v2161_v26 = vld [vmem:[#allocation2 + $0x98] sm:$0xff] }
 0x181   : > { %v3038_v41 = vpop.eup %3037  ;;  %3063 = vrcp.f32 %v2346_v8  ;;  %v2348_v14 = vadd.f32 1.0, %v3036_v13  ;;  %v3787_v13 = vadd.f32 %v3650_v51, %v2194_v21  ;;  %v2200_v43 = vmul.f32 %v3645_v37, %v2161_v26 }
 0x182   : > { %v3040_v44 = vpop.eup %3039  ;;  %3065 = vrcp.f32 %v2347_v33  ;;  %v2349_v30 = vadd.f32 1.0, %v3038_v41  ;;  %v2198_v33 = vmul.f32 %v3645_v37, %v2159_v62  ;;  %v2199_v41 = vmul.f32 %v3645_v37, %v2160_v4 }
 0x183   : > { %v3042_v47 = vpop.eup %3041  ;;  %3067 = vrcp.f32 %v2348_v14  ;;  %v2350_v48 = vadd.f32 1.0, %v3040_v44 }
 0x184   : > { %v3044_v53 = vpop.eup %3043  ;;  %3069 = vrcp.f32 %v2349_v30  ;;  %v2351_v54 = vadd.f32 1.0, %v3042_v47  ;;  %v3806_v30 = vadd.f32 %v3650_v51, %v2197_v12  ;;  %v3812_v37 = vadd.f32 %v3650_v51, %v2198_v33 }
 0x185   : > { %v3046_v58 = vpop.eup %3045  ;;  %v2432_v23 = vmul.f32 %v3044_v53, %v3657_v15  ;;  %3071 = vrcp.f32 %v2350_v48  ;;  %v2784_v48 = vmul.f32 -1.442695, %v3793_v40  ;;  %v3824_v53 = vadd.f32 %v3650_v51, %v2200_v43 }
 0x186   : > { %v3048_v25 = vpop.eup %3047  ;;  %v2433_v7 = vmul.f32 %v3046_v58, %v3663_v17  ;;  %3073 = vrcp.f32 %v2351_v54 }
 0x187   : > { %v3050_v11 = vpop.eup %3049  ;;  %2464 = vst [vmem:[%s3256_s13] sm:$0xff] %v2432_v23  ;;  %v2434_v15 = vmul.f32 %v3048_v25, %v3666_v46  ;;  %3075 = vpow2.f32 %v2774_v31 }
 0x188   : > { %v3052_v17 = vpop.eup %3051  ;;  %2465 = vst [vmem:[%s3256_s13 + $0x8] sm:$0xff] %v2433_v7  ;;  %v2435_v8 = vmul.f32 %v3050_v11, %v3669_v32  ;;  %3077 = vpow2.f32 %v2775_v36  ;;  %v3799_v36 = vadd.f32 %v3650_v51, %v2196_v24 }
 0x189   : > { %v3054_v46 = vpop.eup %3053  ;;  %2466 = vst [vmem:[%s3256_s13 + $0x10] sm:$0xff] %v2434_v15  ;;  %v2436_v31 = vmul.f32 %v3052_v17, %v3674_v35  ;;  %3079 = vpow2.f32 %v2776_v42  ;;  %v2782_v42 = vmul.f32 -1.442695, %v3781_v6 }
 0x18a   : > { %v3056_v14 = vpop.eup %3055  ;;  %2467 = vst [vmem:[%s3256_s13 + $0x18] sm:$0xff] %v2435_v8  ;;  %v2437_v32 = vmul.f32 %v3054_v46, %v3677_v52  ;;  %3081 = vpow2.f32 %v2777_v45  ;;  %v2783_v45 = vmul.f32 -1.442695, %v3787_v13  ;;  %v2785_v39 = vmul.f32 -1.442695, %v3799_v36 }
 0x18b   : > { %v3058_v44 = vpop.eup %3057  ;;  %2468 = vst [vmem:[%s3256_s13 + $0x20] sm:$0xff] %v2436_v31  ;;  %v2438_v35 = vmul.f32 %v3056_v14, %v3680_v20  ;;  %3083 = vpow2.f32 %v2778_v18  ;;  %v3818_v18 = vadd.f32 %v3650_v51, %v2199_v41 }
 0x18c   : > { %v3060_v19 = vpop.eup %3059  ;;  %2469 = vst [vmem:[%s3256_s13 + $0x28] sm:$0xff] %v2437_v32  ;;  %v2439_v52 = vmul.f32 %v3058_v44, %v3686_v57  ;;  %3085 = vpow2.f32 %v2779_v55  ;;  %v2786_v55 = vmul.f32 -1.442695, %v3806_v30 }
 0x18d   : > { %v3062_v47 = vpop.eup %3061  ;;  %2470 = vst [vmem:[%s3256_s13 + $0x30] sm:$0xff] %v2438_v35  ;;  %v2440_v20 = vmul.f32 %v3060_v19, %v3698_v27  ;;  %3087 = vpow2.f32 %v2780_v60 }
 0x18e   : > { %v3064_v50 = vpop.eup %3063  ;;  %2471 = vst [vmem:[%s3256_s13 + $0x38] sm:$0xff] %v2439_v52  ;;  %v2441_v57 = vmul.f32 %v3062_v47, %v3701_v22  ;;  %3089 = vpow2.f32 %v2781_v0  ;;  %v2787_v22 = vmul.f32 -1.442695, %v3812_v37 }
 0x18f   : > { %v3066_v54 = vpop.eup %3065  ;;  %2472 = vst [vmem:[%s3256_s13 + $0x40] sm:$0xff] %v2440_v20  ;;  %v2442_v27 = vmul.f32 %v3064_v50, %v3705_v1  ;;  %3091 = vpow2.f32 %v2782_v42  ;;  %v2788_v1 = vmul.f32 -1.442695, %v3818_v18 }
 0x190   : > { %v3068_v21 = vpop.eup %3067  ;;  %2473 = vst [vmem:[%s3256_s13 + $0x48] sm:$0xff] %v2441_v57  ;;  %v2443_v56 = vmul.f32 %v3066_v54, %v3708_v9  ;;  %3093 = vpow2.f32 %v2783_v45  ;;  %v2789_v9 = vmul.f32 -1.442695, %v3824_v53 }
 0x191   : > { %v3070_v58 = vpop.eup %3069  ;;  %2474 = vst [vmem:[%s3256_s13 + $0x50] sm:$0xff] %v2442_v27  ;;  %v2444_v51 = vmul.f32 %v3068_v21, %v3711_v2  ;;  %3095 = vpow2.f32 %v2784_v48 }
 0x192   : > { %v3072_v23 = vpop.eup %3071  ;;  %2475 = vst [vmem:[%s3256_s13 + $0x58] sm:$0xff] %v2443_v56  ;;  %v2445_v60 = vmul.f32 %v3070_v58, %v3716_v5  ;;  %3097 = vpow2.f32 %v2785_v39 }
 0x193   : > { %v3074_v61 = vpop.eup %3073  ;;  %2476 = vst [vmem:[%s3256_s13 + $0x60] sm:$0xff] %v2444_v51  ;;  %v2446_v62 = vmul.f32 %v3072_v23, %v3725_v10  ;;  %3099 = vpow2.f32 %v2786_v55 }
 0x194   : > { %v3076_v25 = vpop.eup %3075  ;;  %2477 = vst [vmem:[%s3256_s13 + $0x68] sm:$0xff] %v2445_v60  ;;  %v2447_v2 = vmul.f32 %v3074_v61, %v3728_v28  ;;  %3101 = vpow2.f32 %v2787_v22 }
 0x195   : > { %v3078_v7 = vpop.eup %3077  ;;  %2478 = vst [vmem:[%s3256_s13 + $0x70] sm:$0xff] %v2446_v62  ;;  %v2352_v0 = vadd.f32 1.0, %v3076_v25  ;;  %3103 = vpow2.f32 %v2788_v1 }
 0x196   : > { %v3080_v24 = vpop.eup %3079  ;;  %2479 = vst [vmem:[%s3256_s13 + $0x78] sm:$0xff] %v2447_v2  ;;  %v2353_v5 = vadd.f32 1.0, %v3078_v7  ;;  %3105 = vpow2.f32 %v2789_v9 }
 0x197   : > { %v3082_v4 = vpop.eup %3081  ;;  %3107 = vrcp.f32 %v2352_v0  ;;  %v2354_v11 = vadd.f32 1.0, %v3080_v24 }
 0x198   : > { %v3084_v15 = vpop.eup %3083  ;;  %3109 = vrcp.f32 %v2353_v5  ;;  %v2355_v10 = vadd.f32 1.0, %v3082_v4 }
 0x199   : > { %v3086_v12 = vpop.eup %3085  ;;  %3111 = vrcp.f32 %v2354_v11  ;;  %v2356_v26 = vadd.f32 1.0, %v3084_v15 }
 0x19a   : > { %v3088_v17 = vpop.eup %3087  ;;  %3113 = vrcp.f32 %v2355_v10  ;;  %v2357_v28 = vadd.f32 1.0, %v3086_v12 }
 0x19b   : > { %v3090_v8 = vpop.eup %3089  ;;  %3115 = vrcp.f32 %v2356_v26  ;;  %v2358_v33 = vadd.f32 1.0, %v3088_v17 }
 0x19c   : > { %v3092_v46 = vpop.eup %3091  ;;  %3117 = vrcp.f32 %v2357_v28  ;;  %v2359_v31 = vadd.f32 1.0, %v3090_v8 }
 0x19d   : > { %v3094_v41 = vpop.eup %3093  ;;  %3119 = vrcp.f32 %v2358_v33  ;;  %v2360_v14 = vadd.f32 1.0, %v3092_v46 }
 0x19e   : > { %v3096_v32 = vpop.eup %3095  ;;  %3121 = vrcp.f32 %v2359_v31  ;;  %v2361_v43 = vadd.f32 1.0, %v3094_v41 }
 0x19f   : > { %v3098_v44 = vpop.eup %3097  ;;  %3123 = vrcp.f32 %v2360_v14  ;;  %v2362_v35 = vadd.f32 1.0, %v3096_v32 }
 0x1a0   : > { %v3100_v42 = vpop.eup %3099  ;;  %3125 = vrcp.f32 %v2361_v43  ;;  %v2363_v19 = vadd.f32 1.0, %v3098_v44 }
 0x1a1   : > { %v3102_v52 = vpop.eup %3101  ;;  %3127 = vrcp.f32 %v2362_v35  ;;  %v2364_v45 = vadd.f32 1.0, %v3100_v42 }
 0x1a2   : > { %v3104_v47 = vpop.eup %3103  ;;  %3129 = vrcp.f32 %v2363_v19  ;;  %v2365_v20 = vadd.f32 1.0, %v3102_v52 }
 0x1a3   : > { %v3106_v48 = vpop.eup %3105  ;;  %3131 = vrcp.f32 %v2364_v45  ;;  %v2366_v50 = vadd.f32 1.0, %v3104_v47 }
 0x1a4   : > { %v3108_v57 = vpop.eup %3107  ;;  %3133 = vrcp.f32 %v2365_v20  ;;  %v2367_v39 = vadd.f32 1.0, %v3106_v48 }
 0x1a5   : > { %v3110_v54 = vpop.eup %3109  ;;  %v2448_v27 = vmul.f32 %v3108_v57, %v3737_v59  ;;  %3135 = vrcp.f32 %v2366_v50 }
 0x1a6   : > { %v3112_v55 = vpop.eup %3111  ;;  %v2449_v21 = vmul.f32 %v3110_v54, %v3741_v63  ;;  %3137 = vrcp.f32 %v2367_v39 }
 0x1a7   : > { %v3114_v56 = vpop.eup %3113  ;;  %2480 = vst [vmem:[%s3256_s13 + $0x80] sm:$0xff] %v2448_v27  ;;  %v2450_v22 = vmul.f32 %v3112_v55, %v3745_v3 }
 0x1a8   : > { %v3116_v58 = vpop.eup %3115  ;;  %2481 = vst [vmem:[%s3256_s13 + $0x88] sm:$0xff] %v2449_v21  ;;  %v2451_v51 = vmul.f32 %v3114_v56, %v3749_v29 }
 0x1a9   : > { %v3118_v1 = vpop.eup %3117  ;;  %2482 = vst [vmem:[%s3256_s13 + $0x90] sm:$0xff] %v2450_v22  ;;  %v2452_v59 = vmul.f32 %v3116_v58, %v3754_v34 }
 0x1aa   : > { %v3120_v23 = vpop.eup %3119  ;;  %2483 = vst [vmem:[%s3256_s13 + $0x98] sm:$0xff] %v2451_v51  ;;  %v2453_v63 = vmul.f32 %v3118_v1, %v3758_v38 }
 0x1ab   : > { %v3122_v60 = vpop.eup %3121  ;;  %2484 = vst [vmem:[%s3256_s13 + $0xa0] sm:$0xff] %v2452_v59  ;;  %v2454_v3 = vmul.f32 %v3120_v23, %v3762_v49 }
 0x1ac   : > { %v3124_v9 = vpop.eup %3123  ;;  %2485 = vst [vmem:[%s3256_s13 + $0xa8] sm:$0xff] %v2453_v63  ;;  %v2455_v29 = vmul.f32 %v3122_v60, %v3766_v16 }
 0x1ad   : > { %v3126_v61 = vpop.eup %3125  ;;  %2486 = vst [vmem:[%s3256_s13 + $0xb0] sm:$0xff] %v2454_v3  ;;  %v2456_v34 = vmul.f32 %v3124_v9, %v3781_v6 }
 0x1ae   : > { %v3128_v62 = vpop.eup %3127  ;;  %2487 = vst [vmem:[%s3256_s13 + $0xb8] sm:$0xff] %v2455_v29  ;;  %v2457_v38 = vmul.f32 %v3126_v61, %v3787_v13 }
 0x1af   : > { %v3130_v25 = vpop.eup %3129  ;;  %2488 = vst [vmem:[%s3256_s13 + $0xc0] sm:$0xff] %v2456_v34  ;;  %v2458_v49 = vmul.f32 %v3128_v62, %v3793_v40 }
 0x1b0   : > { %v3132_v2 = vpop.eup %3131  ;;  %2489 = vst [vmem:[%s3256_s13 + $0xc8] sm:$0xff] %v2457_v38  ;;  %v2459_v16 = vmul.f32 %v3130_v25, %v3799_v36 }
 0x1b1   : > { %v3134_v7 = vpop.eup %3133  ;;  %2490 = vst [vmem:[%s3256_s13 + $0xd0] sm:$0xff] %v2458_v49  ;;  %v2460_v6 = vmul.f32 %v3132_v2, %v3806_v30 }
 0x1b2   : > { %v3136_v0 = vpop.eup %3135  ;;  %2491 = vst [vmem:[%s3256_s13 + $0xd8] sm:$0xff] %v2459_v16  ;;  %v2461_v24 = vmul.f32 %v3134_v7, %v3812_v37 }
 0x1b3   : > { %v3138_v13 = vpop.eup %3137  ;;  %2492 = vst [vmem:[%s3256_s13 + $0xe0] sm:$0xff] %v2460_v6  ;;  %v2462_v5 = vmul.f32 %v3136_v0, %v3818_v18 }
 0x1b4   : > { %2493 = vst [vmem:[%s3256_s13 + $0xe8] sm:$0xff] %v2461_v24  ;;  %v2463_v40 = vmul.f32 %v3138_v13, %v3824_v53 }
 0x1b5   : > { %2494 = vst [vmem:[%s3256_s13 + $0xf0] sm:$0xff] %v2462_v5 }
 0x1b6   : > { %2495 = vst [vmem:[%s3256_s13 + $0xf8] sm:$0xff] %v2463_v40 }
 0x1b7 PF: > { %s14_s19 = sadd.s32 1, %s3177_s19   ;;  %s3900_s15 = smov %s3169_s17 }
 0x1b8   : > { %p11_p10 = scmp.ge.s32.totalorder %s14_s19, 8   ;;  %s3901_s16 = smov %s3173_s18 }
 0x1b9   : > { %s3902_s17 = smov %s3905_s20  ;;  %s3903_s18 = smov %s3909_s21 }
 0x1ba   :  { %13 = sbr.rel (!%p11_p10) target bundleno = 3 (0x3), region = 85 }

</bundles_post_ra>
